<compile_context>
chip_gen: v5e
topology: v5e:2x2
jax: 0.10.0
libtpu: 0.0.40
codegen_flags: <defaults>
</compile_context>

<pallas_src>
import functools

import numpy as np
import jax
import jax.numpy as jnp
from jax import lax
from jax.experimental import pallas as pl
from jax.experimental.pallas import tpu as pltpu


# ----------------------------- kernel body -----------------------------------
def _layernorm_kernel(x_ref, w_ref, b_ref, o_ref):
    x = x_ref[...].astype(jnp.float32)                     # (tile, C)
    w = w_ref[...].astype(jnp.float32)                     # (1, C)
    b = b_ref[...].astype(jnp.float32)                     # (1, C)

    mu = jnp.mean(x, axis=-1, keepdims=True)
    xc = x - mu
    var = jnp.mean(xc * xc, axis=-1, keepdims=True)        # unbiased=False
    inv = lax.rsqrt(var + 1e-5)                            # EUP rsqrt, not /sqrt
    y = xc * inv * w + b
    o_ref[...] = y.astype(o_ref.dtype)


# ----------------------------- wrapper ----------------------------------------
def with_bias_layernorm(x, weight, bias, *, row_tile=None,
                        vmem_budget_bytes=16 * 1024 * 1024):
    """LayerNorm over the last dim of `x` with affine weight/bias (WithBias)."""
    orig_shape = x.shape
    c = orig_shape[-1]
    n = int(np.prod(orig_shape[:-1])) if len(orig_shape) > 1 else 1
    x2 = x.reshape(n, c)

    if row_tile is None:
        # in + out tiles, double-buffered, f32 compute copy -> ~4*C*4 bytes/row.
        bytes_per_row = max(c * 4 * 4, 1)
        row_tile = min(1024, vmem_budget_bytes // bytes_per_row)
        row_tile = max(8, (row_tile // 8) * 8)
    # never ask for more rows than (rounded-up) exist
    row_tile = min(row_tile, max(8, ((n + 7) // 8) * 8))

    n_pad = pl.cdiv(n, row_tile) * row_tile
    if n_pad != n:
        # pad tail rows with zeros; padded rows are well-defined (var=0 -> finite)
        # and sliced off below, so no rows are silently dropped.
        x2 = jnp.pad(x2, ((0, n_pad - n), (0, 0)))

    out = pl.pallas_call(
        _layernorm_kernel,
        out_shape=jax.ShapeDtypeStruct((n_pad, c), x.dtype),
        grid=(n_pad // row_tile,),
        in_specs=[pl.BlockSpec((row_tile, c), lambda i: (i, 0)),
                  pl.BlockSpec((1, c), lambda i: (0, 0)),
                  pl.BlockSpec((1, c), lambda i: (0, 0))],
        out_specs=pl.BlockSpec((row_tile, c), lambda i: (i, 0)),
        compiler_params=pltpu.CompilerParams(
            dimension_semantics=("parallel",),          # megacore on v7x
            vmem_limit_bytes=32 * 1024 * 1024),
    )(x2, weight.reshape(1, c), bias.reshape(1, c))

    if n_pad != n:
        out = out[:n]
    return out.reshape(orig_shape)


# ----------------------------- pure-JAX reference ------------------------------
def _reference(x, weight, bias):
    mu = jnp.mean(x, -1, keepdims=True)
    var = jnp.mean((x - mu) ** 2, -1, keepdims=True)
    return (x - mu) / jnp.sqrt(var + 1e-5) * weight + bias


# ----------------------------- main --------------------------------------------
if __name__ == "__main__":
    key = jax.random.PRNGKey(0)
    k1, k2, k3, k4 = jax.random.split(key, 4)

    # Case 1: channels-last activation slab (batch=2, H=16, W=16, C=64),
    #         the layout in which Restormer applies this LayerNorm.
    x1 = jax.random.normal(k1, (2, 16, 16, 64), jnp.float32)
    w1 = 1.0 + 0.1 * jax.random.normal(k2, (64,), jnp.float32)
    b1 = 0.1 * jax.random.normal(k3, (64,), jnp.float32)

    fwd = jax.jit(with_bias_layernorm)
    out1 = jax.block_until_ready(fwd(x1, w1, b1))
    ref1 = _reference(x1, w1, b1)
    np.testing.assert_allclose(np.asarray(out1), np.asarray(ref1),
                               atol=1e-5, rtol=1e-5)

    # Case 2: ragged row count (3*7 = 21 rows, C=48) — exercises the cdiv+pad
    #         tail path that the previous version silently dropped.
    x2 = jax.random.normal(k4, (3, 7, 48), jnp.float32)
    w2 = jnp.ones((48,), jnp.float32)      # module's default init
    b2 = jnp.zeros((48,), jnp.float32)
    out2 = jax.block_until_ready(jax.jit(with_bias_layernorm)(x2, w2, b2))
    ref2 = _reference(x2, w2, b2)
    np.testing.assert_allclose(np.asarray(out2), np.asarray(ref2),
                               atol=1e-5, rtol=1e-5)

    assert out1.shape == x1.shape and out2.shape == x2.shape
    print("KERNEL_OK")
</pallas_src>

<mosaic_0001>
module attributes {stable_mosaic.version = 11 : i64} {
  func.func @_layernorm_kernel(%arg0: i32, %arg1: memref<512x64xf32, #tpu.memory_space<vmem>>, %arg2: memref<1x64xf32, #tpu.memory_space<vmem>>, %arg3: memref<1x64xf32, #tpu.memory_space<vmem>>, %arg4: memref<512x64xf32, #tpu.memory_space<vmem>>) attributes {dimension_semantics = [#tpu.dimension_semantics<parallel>], iteration_bounds = array<i64: 1>, scalar_prefetch = 0 : i64, scratch_operands = 0 : i64, tpu.core_type = #tpu.core_type<tc>, window_params = [{transform_indices = @transform_0, window_bounds = array<i64: 512, 64>}, {pipeline_mode = #tpu.pipeline_mode<synchronous>, transform_indices = @transform_1, window_bounds = array<i64: 1, 64>}, {pipeline_mode = #tpu.pipeline_mode<synchronous>, transform_indices = @transform_2, window_bounds = array<i64: 1, 64>}, {transform_indices = @transform_3, window_bounds = array<i64: 512, 64>}]} {
    %c0 = arith.constant 0 : index
    %c0_0 = arith.constant 0 : index
    %0 = vector.load %arg1[%c0, %c0_0] : memref<512x64xf32, #tpu.memory_space<vmem>>, vector<512x64xf32>
    %c0_1 = arith.constant 0 : index
    %c0_2 = arith.constant 0 : index
    %1 = vector.load %arg2[%c0_1, %c0_2] : memref<1x64xf32, #tpu.memory_space<vmem>>, vector<1x64xf32>
    %c0_3 = arith.constant 0 : index
    %c0_4 = arith.constant 0 : index
    %2 = vector.load %arg3[%c0_3, %c0_4] : memref<1x64xf32, #tpu.memory_space<vmem>>, vector<1x64xf32>
    %cst = arith.constant dense<0.000000e+00> : vector<512xf32>
    %3 = vector.multi_reduction <add>, %0, %cst [1] : vector<512x64xf32> to vector<512xf32>
    %4 = vector.shape_cast %3 : vector<512xf32> to vector<512x1xf32>
    %cst_5 = arith.constant 6.400000e+01 : f32
    %5 = vector.broadcast %cst_5 : f32 to vector<512x1xf32>
    %6 = arith.divf %4, %5 : vector<512x1xf32>
    %7 = vector.broadcast %6 : vector<512x1xf32> to vector<512x64xf32>
    %8 = arith.subf %0, %7 : vector<512x64xf32>
    %9 = arith.mulf %8, %8 : vector<512x64xf32>
    %cst_6 = arith.constant dense<0.000000e+00> : vector<512xf32>
    %10 = vector.multi_reduction <add>, %9, %cst_6 [1] : vector<512x64xf32> to vector<512xf32>
    %11 = vector.shape_cast %10 : vector<512xf32> to vector<512x1xf32>
    %cst_7 = arith.constant 6.400000e+01 : f32
    %12 = vector.broadcast %cst_7 : f32 to vector<512x1xf32>
    %13 = arith.divf %11, %12 : vector<512x1xf32>
    %cst_8 = arith.constant 9.99999974E-6 : f32
    %14 = vector.broadcast %cst_8 : f32 to vector<512x1xf32>
    %15 = arith.addf %13, %14 : vector<512x1xf32>
    %16 = math.rsqrt %15 : vector<512x1xf32>
    %17 = vector.broadcast %16 : vector<512x1xf32> to vector<512x64xf32>
    %18 = arith.mulf %8, %17 : vector<512x64xf32>
    %19 = vector.broadcast %1 : vector<1x64xf32> to vector<512x64xf32>
    %20 = arith.mulf %18, %19 : vector<512x64xf32>
    %21 = vector.broadcast %2 : vector<1x64xf32> to vector<512x64xf32>
    %22 = arith.addf %20, %21 : vector<512x64xf32>
    %c0_9 = arith.constant 0 : index
    %c0_10 = arith.constant 0 : index
    %23 = vector.load %arg4[%c0_9, %c0_10] : memref<512x64xf32, #tpu.memory_space<vmem>>, vector<512x64xf32>
    tpu.vector_store %arg4[%c0_9, %c0_10], %22 {strides = array<i32>} : memref<512x64xf32, #tpu.memory_space<vmem>>, vector<512x64xf32>,
    return
  }
  func.func @transform_0(%arg0: i32) -> (i32, i32) {
    %c0_i32 = arith.constant 0 : i32
    %c0_i32_0 = arith.constant 0 : i32
    return %arg0, %c0_i32 : i32, i32
  }
  func.func @transform_1(%arg0: i32) -> (i32, i32) {
    %c0_i32 = arith.constant 0 : i32
    %c0_i32_0 = arith.constant 0 : i32
    %c0_i32_1 = arith.constant 0 : i32
    return %c0_i32, %c0_i32_0 : i32, i32
  }
  func.func @transform_2(%arg0: i32) -> (i32, i32) {
    %c0_i32 = arith.constant 0 : i32
    %c0_i32_0 = arith.constant 0 : i32
    %c0_i32_1 = arith.constant 0 : i32
    return %c0_i32, %c0_i32_0 : i32, i32
  }
  func.func @transform_3(%arg0: i32) -> (i32, i32) {
    %c0_i32 = arith.constant 0 : i32
    %c0_i32_0 = arith.constant 0 : i32
    return %arg0, %c0_i32 : i32, i32
  }
}

</mosaic_0001>

<bundles_post_ra>
// kernel: with_bias_layernorm.1
= control target key start
LH: loop header
LB: loop body
LE: loop exit
PB: predicated region body
PF: predicated region fallthrough
CT: control target
= control target key end

     0   :  { %8 = vsyncpa [#allocation3], 0  ;;  %s4181_s0 = inlined_call_operand.hbm [shape: f32[512,64], index: 0, kind: input, shape index: {}]   ;;  %s4182_s1 = inlined_call_operand.vmem [shape: f32[1,64], index: 1, kind: input, shape index: {}]   ;;  %s4183_s2 = inlined_call_operand.vmem [shape: f32[1,64], index: 2, kind: input, shape index: {}]   ;;  %s4184_s3 = inlined_call_operand.hbm [shape: f32[512,64], index: 3, kind: output, shape index: {}]  }
   0x1   :  { %9 = vsyncpa [#allocation4], 0  ;;  %s14_s14 = sshll.u32 %s4181_s0, 4  ;;  %s1923_s15 = smov [#allocation2]   ;;  %s15_s14 = int_to_ptr.hbm [resolvable:$true] %s14_s14 }
   0x2   :  { %s16_s16 = sshll.u32 %s1923_s15, 4  ;;  %s1924_s17 = smov 128   ;;  %s17_s16 = int_to_ptr.vmem [resolvable:$true] %s16_s16 }
   0x3   :  { %s1925_s18 = smov 8  }
   0x4   :  { %22 = dma.hbm_to_vmem [thread:$0]  %s15_s14, 8192, %s17_s16, [#allocation3], %s1924_s17, %s1924_s17, %s1925_s18  }
   0x5   :  { %1919 = dma.done.wait [#allocation3], 8192  }
   0x6   :  { %1920 = vsyncadd [#allocation3], 4294959104  ;;  %vm97_vm0 = vcmask 523264   ;;  %v1954_v0 = vld [vmem:[#allocation2 + $0x20] sm:$0xff]  ;;  %v1956_v1 = vld [vmem:[#allocation2 + $0x10] sm:$0xff]  ;;  %s1717_s5 = sshll.u32 %s4184_s3, 4  ;;  %s1718_s5 = int_to_ptr.hbm [resolvable:$true] %s1717_s5 }
   0x7   :  { %v1958_v2 = vld [vmem:[#allocation2] sm:$0xff]  ;;  %v110_v3 = vsel %vm97_vm0, %v1954_v0, 0.0  ;;  %v104_v4 = vsel %vm97_vm0, %v1956_v1, 0.0  ;;  %v1966_v6 = vld [vmem:[#allocation2 + $0x28] sm:$0xff]  ;;  %v1968_v7 = vld [vmem:[#allocation2 + $0x18] sm:$0xff] }
   0x8   :  { %v98_v5 = vsel %vm97_vm0, %v1958_v2, 0.0  ;;  %111 = vadd.xlane.f32.xlu2 %v110_v3  ;;  %105 = vadd.xlane.f32.xlu1 %v104_v4  ;;  %v1970_v8 = vld [vmem:[#allocation2 + $0x8] sm:$0xff]  ;;  %v113_v9 = vsel %vm97_vm0, %v1966_v6, 0.0  ;;  %v107_v10 = vsel %vm97_vm0, %v1968_v7, 0.0  ;;  %v1978_v12 = vld [vmem:[#allocation2 + $0x40] sm:$0xff]  ;;  %v1980_v13 = vld [vmem:[#allocation2 + $0x38] sm:$0xff] }
   0x9   :  { %99 = vadd.xlane.f32.xlu0 %v98_v5  ;;  %v101_v11 = vsel %vm97_vm0, %v1970_v8, 0.0  ;;  %v1982_v14 = vld [vmem:[#allocation2 + $0x30] sm:$0xff]  ;;  %v122_v15 = vsel %vm97_vm0, %v1978_v12, 0.0  ;;  %v119_v16 = vsel %vm97_vm0, %v1980_v13, 0.0  ;;  %v1990_v18 = vld [vmem:[#allocation2 + $0x58] sm:$0xff]  ;;  %v1994_v20 = vld [vmem:[#allocation2 + $0x48] sm:$0xff] }
   0xa   :  { %v116_v17 = vsel %vm97_vm0, %v1982_v14, 0.0  ;;  %v1992_v19 = vld [vmem:[#allocation2 + $0x50] sm:$0xff]  ;;  %v131_v21 = vsel %vm97_vm0, %v1990_v18, 0.0  ;;  %v125_v23 = vsel %vm97_vm0, %v1994_v20, 0.0  ;;  %v2004_v25 = vld [vmem:[#allocation2 + $0x68] sm:$0xff]  ;;  %v2006_v26 = vld [vmem:[#allocation2 + $0x60] sm:$0xff] }
   0xb   :  { %v128_v22 = vsel %vm97_vm0, %v1992_v19, 0.0  ;;  %v2002_v24 = vld [vmem:[#allocation2 + $0x70] sm:$0xff]  ;;  %v137_v28 = vsel %vm97_vm0, %v2004_v25, 0.0  ;;  %v134_v29 = vsel %vm97_vm0, %v2006_v26, 0.0  ;;  %v2014_v30 = vld [vmem:[#allocation2 + $0x88] sm:$0xff]  ;;  %v2016_v31 = vld [vmem:[#allocation2 + $0x80] sm:$0xff] }
   0xc   :  { %v140_v27 = vsel %vm97_vm0, %v2002_v24, 0.0  ;;  %v2018_v32 = vld [vmem:[#allocation2 + $0x78] sm:$0xff]  ;;  %v149_v33 = vsel %vm97_vm0, %v2014_v30, 0.0  ;;  %v146_v34 = vsel %vm97_vm0, %v2016_v31, 0.0  ;;  %v2026_v36 = vld [vmem:[#allocation2 + $0xa0] sm:$0xff]  ;;  %v2030_v38 = vld [vmem:[#allocation2 + $0x90] sm:$0xff] }
   0xd   :  { %v143_v35 = vsel %vm97_vm0, %v2018_v32, 0.0  ;;  %v2028_v37 = vld [vmem:[#allocation2 + $0x98] sm:$0xff]  ;;  %v158_v39 = vsel %vm97_vm0, %v2026_v36, 0.0  ;;  %v152_v41 = vsel %vm97_vm0, %v2030_v38, 0.0  ;;  %v2040_v43 = vld [vmem:[#allocation2 + $0xb0] sm:$0xff]  ;;  %v2042_v44 = vld [vmem:[#allocation2 + $0xa8] sm:$0xff] }
   0xe   :  { %v155_v40 = vsel %vm97_vm0, %v2028_v37, 0.0  ;;  %v2038_v42 = vld [vmem:[#allocation2 + $0xb8] sm:$0xff]  ;;  %v164_v46 = vsel %vm97_vm0, %v2040_v43, 0.0  ;;  %v161_v47 = vsel %vm97_vm0, %v2042_v44, 0.0  ;;  %v2050_v48 = vld [vmem:[#allocation2 + $0xd0] sm:$0xff]  ;;  %v2052_v49 = vld [vmem:[#allocation2 + $0xc8] sm:$0xff] }
   0xf   :  { %v167_v45 = vsel %vm97_vm0, %v2038_v42, 0.0  ;;  %v2054_v50 = vld [vmem:[#allocation2 + $0xc0] sm:$0xff]  ;;  %v176_v51 = vsel %vm97_vm0, %v2050_v48, 0.0  ;;  %v173_v52 = vsel %vm97_vm0, %v2052_v49, 0.0  ;;  %v2062_v54 = vld [vmem:[#allocation2 + $0xe8] sm:$0xff]  ;;  %v2066_v56 = vld [vmem:[#allocation2 + $0xd8] sm:$0xff] }
  0x10   :  { %114 = vadd.xlane.f32.xlu2 %v113_v9  ;;  %108 = vadd.xlane.f32.xlu1 %v107_v10  ;;  %v170_v53 = vsel %vm97_vm0, %v2054_v50, 0.0  ;;  %v2064_v55 = vld [vmem:[#allocation2 + $0xe0] sm:$0xff]  ;;  %v185_v57 = vsel %vm97_vm0, %v2062_v54, 0.0  ;;  %v179_v59 = vsel %vm97_vm0, %v2066_v56, 0.0  ;;  %v2076_v61 = vld [vmem:[#allocation2 + $0xf8] sm:$0xff]  ;;  %v2078_v62 = vld [vmem:[#allocation2 + $0xf0] sm:$0xff] }
  0x11   :  { %102 = vadd.xlane.f32.xlu0 %v101_v11  ;;  %v182_v58 = vsel %vm97_vm0, %v2064_v55, 0.0  ;;  %v2074_v60 = vld [vmem:[#allocation2 + $0x100] sm:$0xff]  ;;  %v191_v3 = vsel %vm97_vm0, %v2076_v61, 0.0  ;;  %v188_v4 = vsel %vm97_vm0, %v2078_v62, 0.0  ;;  %v2086_v5 = vld [vmem:[#allocation2 + $0x118] sm:$0xff]  ;;  %v2088_v9 = vld [vmem:[#allocation2 + $0x110] sm:$0xff] }
  0x12   :  { %v194_v63 = vsel %vm97_vm0, %v2074_v60, 0.0  ;;  %4254 = vst [vmem:[#allocation8_spill] sm:$0xff] %v2086_v5  ;;  %v2090_v10 = vld [vmem:[#allocation2 + $0x108] sm:$0xff]  ;;  %v203_v11 = vsel %vm97_vm0, %v2086_v5, 0.0 }
  0x18   :  { %123 = vadd.xlane.f32.xlu2 %v122_v15  ;;  %120 = vadd.xlane.f32.xlu1 %v119_v16  ;;  %v200_v15 = vsel %vm97_vm0, %v2088_v9, 0.0  ;;  %v197_v16 = vsel %vm97_vm0, %v2090_v10, 0.0 }
  0x19   :  { %117 = vadd.xlane.f32.xlu0 %v116_v17  ;;  %v2098_v17 = vld [vmem:[#allocation2 + $0x130] sm:$0xff] }
  0x1a   :  { %4255 = vst [vmem:[#allocation9_spill] sm:$0xff] %v2098_v17 }
  0x20   :  { %132 = vadd.xlane.f32.xlu2 %v131_v21  ;;  %129 = vadd.xlane.f32.xlu1 %v128_v22  ;;  %v2100_v21 = vld [vmem:[#allocation2 + $0x128] sm:$0xff]  ;;  %v2102_v22 = vld [vmem:[#allocation2 + $0x120] sm:$0xff] }
  0x21   :  { %126 = vadd.xlane.f32.xlu0 %v125_v23  ;;  %4256 = vst [vmem:[#allocation10_spill] sm:$0xff] %v2100_v21  ;;  %v212_v23 = vsel %vm97_vm0, %v2098_v17, 0.0  ;;  %v2206_v17 = vld [vmem:[#allocation2 + $0x1d0] sm:$0xff] }
  0x22   :  { %4257 = vst [vmem:[#allocation11_spill] sm:$0xff] %v2102_v22 }
  0x23   :  { %4277 = vst [vmem:[#allocation31_spill] sm:$0xff] %v2206_v17 }
  0x28   :  { %141 = vadd.xlane.f32.xlu2 %v140_v27  ;;  %138 = vadd.xlane.f32.xlu1 %v137_v28  ;;  %v209_v27 = vsel %vm97_vm0, %v2100_v21, 0.0  ;;  %v206_v28 = vsel %vm97_vm0, %v2102_v22, 0.0  ;;  %v2235_v21 = vld [vmem:[#allocation2 + $0x1e0] sm:$0xff] }
  0x29   :  { %135 = vadd.xlane.f32.xlu0 %v134_v29  ;;  %v2110_v29 = vld [vmem:[#allocation2 + $0x148] sm:$0xff]  ;;  %4281 = vst [vmem:[#allocation35_spill] sm:$0xff] %v2235_v21 }
  0x2a   :  { %4258 = vst [vmem:[#allocation12_spill] sm:$0xff] %v2110_v29 }
  0x30   :  { %150 = vadd.xlane.f32.xlu2 %v149_v33  ;;  %147 = vadd.xlane.f32.xlu1 %v146_v34  ;;  %v2112_v33 = vld [vmem:[#allocation2 + $0x140] sm:$0xff]  ;;  %v2114_v34 = vld [vmem:[#allocation2 + $0x138] sm:$0xff] }
  0x31   :  { %144 = vadd.xlane.f32.xlu0 %v143_v35  ;;  %4259 = vst [vmem:[#allocation13_spill] sm:$0xff] %v2112_v33  ;;  %v221_v35 = vsel %vm97_vm0, %v2110_v29, 0.0 }
  0x32   :  { %4260 = vst [vmem:[#allocation14_spill] sm:$0xff] %v2114_v34 }
  0x38   :  { %159 = vadd.xlane.f32.xlu2 %v158_v39  ;;  %156 = vadd.xlane.f32.xlu1 %v155_v40  ;;  %v218_v39 = vsel %vm97_vm0, %v2112_v33, 0.0  ;;  %v215_v40 = vsel %vm97_vm0, %v2114_v34, 0.0  ;;  %v2212_v33 = vld [vmem:[#allocation2 + $0x1c8] sm:$0xff] }
  0x39   :  { %153 = vadd.xlane.f32.xlu0 %v152_v41  ;;  %v2122_v41 = vld [vmem:[#allocation2 + $0x160] sm:$0xff]  ;;  %4278 = vst [vmem:[#allocation32_spill] sm:$0xff] %v2212_v33 }
  0x3a   :  { %4261 = vst [vmem:[#allocation15_spill] sm:$0xff] %v2122_v41 }
  0x40   :  { %168 = vadd.xlane.f32.xlu2 %v167_v45  ;;  %165 = vadd.xlane.f32.xlu1 %v164_v46  ;;  %v2124_v45 = vld [vmem:[#allocation2 + $0x158] sm:$0xff]  ;;  %v2126_v46 = vld [vmem:[#allocation2 + $0x150] sm:$0xff] }
  0x41   :  { %162 = vadd.xlane.f32.xlu0 %v161_v47  ;;  %4262 = vst [vmem:[#allocation16_spill] sm:$0xff] %v2124_v45  ;;  %v230_v47 = vsel %vm97_vm0, %v2122_v41, 0.0 }
  0x42   :  { %4263 = vst [vmem:[#allocation17_spill] sm:$0xff] %v2126_v46 }
  0x48   :  { %177 = vadd.xlane.f32.xlu2 %v176_v51  ;;  %174 = vadd.xlane.f32.xlu1 %v173_v52  ;;  %v227_v51 = vsel %vm97_vm0, %v2124_v45, 0.0  ;;  %v224_v52 = vsel %vm97_vm0, %v2126_v46, 0.0  ;;  %v2194_v46 = vld [vmem:[#allocation2 + $0x1b0] sm:$0xff] }
  0x49   :  { %171 = vadd.xlane.f32.xlu0 %v170_v53  ;;  %v2134_v53 = vld [vmem:[#allocation2 + $0x178] sm:$0xff]  ;;  %4275 = vst [vmem:[#allocation29_spill] sm:$0xff] %v2194_v46 }
  0x4a   :  { %4264 = vst [vmem:[#allocation18_spill] sm:$0xff] %v2134_v53 }
  0x50   :  { %186 = vadd.xlane.f32.xlu2 %v185_v57  ;;  %183 = vadd.xlane.f32.xlu1 %v182_v58  ;;  %v2136_v57 = vld [vmem:[#allocation2 + $0x170] sm:$0xff] }
  0x51   :  { %180 = vadd.xlane.f32.xlu0 %v179_v59  ;;  %4265 = vst [vmem:[#allocation19_spill] sm:$0xff] %v2136_v57 }
  0x58   :  { %195 = vadd.xlane.f32.xlu2 %v194_v63  ;;  %192 = vadd.xlane.f32.xlu1 %v191_v3  ;;  %v2142_v63 = vld [vmem:[#allocation2 + $0x168] sm:$0xff] }
  0x59   :  { %189 = vadd.xlane.f32.xlu0 %v188_v4  ;;  %4266 = vst [vmem:[#allocation20_spill] sm:$0xff] %v2142_v63  ;;  %v239_v4 = vsel %vm97_vm0, %v2134_v53, 0.0 }
  0x60   :  { %204 = vadd.xlane.f32.xlu2 %v203_v11  ;;  %201 = vadd.xlane.f32.xlu1 %v200_v15  ;;  %v236_v11 = vsel %vm97_vm0, %v2136_v57, 0.0  ;;  %v233_v15 = vsel %vm97_vm0, %v2142_v63, 0.0  ;;  %v2188_v57 = vld [vmem:[#allocation2 + $0x1b8] sm:$0xff] }
  0x61   :  { %198 = vadd.xlane.f32.xlu0 %v197_v16  ;;  %v2152_v16 = vld [vmem:[#allocation2 + $0x190] sm:$0xff]  ;;  %4274 = vst [vmem:[#allocation28_spill] sm:$0xff] %v2188_v57 }
  0x62   :  { %4267 = vst [vmem:[#allocation21_spill] sm:$0xff] %v2152_v16 }
  0x68   :  { %213 = vadd.xlane.f32.xlu2 %v212_v23  ;;  %210 = vadd.xlane.f32.xlu1 %v209_v27  ;;  %v2154_v23 = vld [vmem:[#allocation2 + $0x188] sm:$0xff] }
  0x69   :  { %207 = vadd.xlane.f32.xlu0 %v206_v28  ;;  %4268 = vst [vmem:[#allocation22_spill] sm:$0xff] %v2154_v23 }
  0x70   :  { %222 = vadd.xlane.f32.xlu2 %v221_v35  ;;  %219 = vadd.xlane.f32.xlu1 %v218_v39  ;;  %v2160_v35 = vld [vmem:[#allocation2 + $0x180] sm:$0xff] }
  0x71   :  { %216 = vadd.xlane.f32.xlu0 %v215_v40  ;;  %4269 = vst [vmem:[#allocation23_spill] sm:$0xff] %v2160_v35  ;;  %v248_v40 = vsel %vm97_vm0, %v2152_v16, 0.0  ;;  %v2176_v16 = vld [vmem:[#allocation2 + $0x198] sm:$0xff] }
  0x72   :  { %4272 = vst [vmem:[#allocation26_spill] sm:$0xff] %v2176_v16 }
  0x78   :  { %231 = vadd.xlane.f32.xlu2 %v230_v47  ;;  %228 = vadd.xlane.f32.xlu1 %v227_v51  ;;  %v245_v47 = vsel %vm97_vm0, %v2154_v23, 0.0  ;;  %v242_v51 = vsel %vm97_vm0, %v2160_v35, 0.0 }
  0x79   :  { %225 = vadd.xlane.f32.xlu0 %v224_v52  ;;  %v1926_v52 = vmov 64.0  }
  0x7a   :  { %1737 = vrcp.f32 %v1926_v52  ;;  %v2186_v52 = vld [vmem:[#allocation2 + $0x1c0] sm:$0xff] }
  0x7b   :  { %v2138_v58 = vpop.xlane.xlu2 %111  ;;  %v2140_v59 = vpop.xlane.xlu1 %105  ;;  %4273 = vst [vmem:[#allocation27_spill] sm:$0xff] %v2186_v52 }
  0x7c   :  { %v2144_v3 = vpop.xlane.xlu0 %99 }
  0x80   :  { %240 = vadd.xlane.f32.xlu2 %v239_v4  ;;  %237 = vadd.xlane.f32.xlu1 %v236_v11  ;;  %v2168_v4 = vld [vmem:[#allocation2 + $0x1a8] sm:$0xff]  ;;  %v2170_v11 = vld [vmem:[#allocation2 + $0x1a0] sm:$0xff]  ;;  %v1738_v23 = vpop.eup %1737 }
  0x81   :  { %234 = vadd.xlane.f32.xlu0 %v233_v15  ;;  %4270 = vst [vmem:[#allocation24_spill] sm:$0xff] %v2168_v4  ;;  %v257_v35 = vsel %vm97_vm0, %v2168_v4, 0.0  ;;  %vm295_vm1 = vweird.f32 %v1738_v23 }
  0x82   :  { %4271 = vst [vmem:[#allocation25_spill] sm:$0xff] %v2170_v11 }
  0x83   :  { %v2156_v27 = vpop.xlane.xlu2 %114  ;;  %v2158_v28 = vpop.xlane.xlu1 %108 }
  0x84   :  { %v103_v39 = vpop.xlane.xlu0 %102 }
  0x88   :  { %249 = vadd.xlane.f32.xlu2 %v248_v40  ;;  %246 = vadd.xlane.f32.xlu1 %v245_v47  ;;  %v254_v40 = vsel %vm97_vm0, %v2170_v11, 0.0  ;;  %v251_v47 = vsel %vm97_vm0, %v2176_v16, 0.0  ;;  %v266_v16 = vsel %vm97_vm0, %v2186_v52, 0.0  ;;  %v2204_v11 = vld [vmem:[#allocation2 + $0x1d8] sm:$0xff] }
  0x89   :  { %243 = vadd.xlane.f32.xlu0 %v242_v51  ;;  %v291_v51 = vmul.f32 64.0, %v1738_v23  ;;  %4276 = vst [vmem:[#allocation30_spill] sm:$0xff] %v2204_v11 }
  0x8b   :  { %v2172_v15 = vpop.xlane.xlu2 %123  ;;  %v2174_v63 = vpop.xlane.xlu1 %120  ;;  %v292_v4 = vsub.f32 1.0, %v291_v51 }
  0x8c   :  { %v2178_v53 = vpop.xlane.xlu0 %117 }
  0x90   :  { %258 = vadd.xlane.f32.xlu2 %v257_v35  ;;  %255 = vadd.xlane.f32.xlu1 %v254_v40  ;;  %v263_v35 = vsel %vm97_vm0, %v2188_v57, 0.0  ;;  %v260_v40 = vsel %vm97_vm0, %v2194_v46, 0.0  ;;  %v2224_v46 = vld [vmem:[#allocation2 + $0x1f0] sm:$0xff] }
  0x91   :  { %252 = vadd.xlane.f32.xlu0 %v251_v47  ;;  %v293_v47 = vmul.f32 %v1738_v23, %v292_v4  ;;  %v275_v4 = vsel %vm97_vm0, %v2204_v11, 0.0  ;;  %4279 = vst [vmem:[#allocation33_spill] sm:$0xff] %v2224_v46 }
  0x93   :  { %v2190_v41 = vpop.xlane.xlu2 %132  ;;  %v2192_v29 = vpop.xlane.xlu1 %129  ;;  %v294_v52 = vadd.f32 %v1738_v23, %v293_v47  ;;  %v2226_v47 = vld [vmem:[#allocation2 + $0x1e8] sm:$0xff] }
  0x94   :  { %v2196_v45 = vpop.xlane.xlu0 %126  ;;  %4280 = vst [vmem:[#allocation34_spill] sm:$0xff] %v2226_v47 }
  0x98   :  { %267 = vadd.xlane.f32.xlu2 %v266_v16  ;;  %264 = vadd.xlane.f32.xlu1 %v263_v35  ;;  %v272_v16 = vsel %vm97_vm0, %v2206_v17, 0.0  ;;  %v269_v35 = vsel %vm97_vm0, %v2212_v33, 0.0 }
  0x99   :  { %261 = vadd.xlane.f32.xlu0 %v260_v40  ;;  %v2222_v40 = vsel %vm295_vm1, %v1738_v23, %v294_v52  ;;  %v284_v52 = vsel %vm97_vm0, %v2224_v46, 0.0 }
  0x9a   :  { %v297_v57 = vmul.f32 %v2222_v40, %v2144_v3  ;;  %v298_v11 = vmul.f32 %v2222_v40, %v103_v39  ;;  %v300_v46 = vmul.f32 %v2222_v40, %v2158_v28 }
  0x9b   :  { %v2208_v51 = vpop.xlane.xlu2 %141  ;;  %v2210_v34 = vpop.xlane.xlu1 %138 }
  0x9c   :  { %v2214_v5 = vpop.xlane.xlu0 %135  ;;  %v2246_v3 = vsub.f32 %v1958_v2, %v297_v57  ;;  %v2249_v39 = vsub.f32 %v1970_v8, %v298_v11  ;;  %v299_v57 = vmul.f32 %v2222_v40, %v2140_v59  ;;  %v304_v59 = vmul.f32 %v2222_v40, %v2174_v63 }
  0x9e   :  { %4282 = vst [vmem:[#allocation36_spill] sm:$0xff] %v2249_v39  ;;  %v425_v2 = vmul.f32 %v2246_v3, %v2246_v3  ;;  %v426_v8 = vmul.f32 %v2249_v39, %v2249_v39  ;;  %v2280_v39 = vsub.f32 %v1956_v1, %v299_v57 }
  0xa0   :  { %276 = vadd.xlane.f32.xlu2 %v275_v4  ;;  %273 = vadd.xlane.f32.xlu1 %v272_v16  ;;  %v281_v4 = vsel %vm97_vm0, %v2226_v47, 0.0  ;;  %v278_v16 = vsel %vm97_vm0, %v2235_v21, 0.0  ;;  %v2259_v21 = vld [vmem:[#allocation2 + $0x1f8] sm:$0xff]  ;;  %4283 = vst [vmem:[#allocation37_spill] sm:$0xff] %v2280_v39  ;;  %v427_v63 = vmul.f32 %v2280_v39, %v2280_v39  ;;  %v307_v39 = vmul.f32 %v2222_v40, %v2192_v29 }
  0xa1   :  { %270 = vadd.xlane.f32.xlu0 %v269_v35  ;;  %v301_v35 = vmul.f32 %v2222_v40, %v2138_v58  ;;  %v287_v58 = vsel %vm97_vm0, %v2259_v21, 0.0 }
  0xa3   :  { %v2231_v22 = vpop.xlane.xlu2 %150  ;;  %v2233_v17 = vpop.xlane.xlu1 %147  ;;  %v2272_v28 = vsub.f32 %v1954_v0, %v301_v35  ;;  %v303_v0 = vmul.f32 %v2222_v40, %v2178_v53  ;;  %v2301_v53 = vsub.f32 %v1980_v13, %v304_v59  ;;  %v306_v13 = vmul.f32 %v2222_v40, %v2196_v45 }
  0xa4   :  { %v2237_v23 = vpop.xlane.xlu0 %144  ;;  %v2331_v45 = vsub.f32 %v1992_v19, %v307_v39  ;;  %v309_v19 = vmul.f32 %v2222_v40, %v2214_v5 }
  0xa5   :  { %v429_v1 = vmul.f32 %v2272_v28, %v2272_v28  ;;  %v2304_v57 = vsub.f32 %v1982_v14, %v303_v0  ;;  %v432_v0 = vmul.f32 %v2301_v53, %v2301_v53 }
  0xa8   :  { %285 = vadd.xlane.f32.xlu2 %v284_v52  ;;  %282 = vadd.xlane.f32.xlu1 %v281_v4  ;;  %v2275_v52 = vsub.f32 %v1968_v7, %v300_v46  ;;  %v489_v4 = vsel %vm97_vm0, %v425_v2, 0.0  ;;  %v302_v2 = vmul.f32 %v2222_v40, %v2156_v27  ;;  %v495_v27 = vsel %vm97_vm0, %v427_v63, 0.0 }
  0xa9   :  { %279 = vadd.xlane.f32.xlu0 %v278_v16  ;;  %v492_v16 = vsel %vm97_vm0, %v426_v8, 0.0  ;;  %v510_v63 = vsel %vm97_vm0, %v432_v0, 0.0  ;;  %v308_v0 = vmul.f32 %v2222_v40, %v2190_v41 }
  0xaa   :  { %v428_v46 = vmul.f32 %v2275_v52, %v2275_v52 }
  0xab   :  { %v2255_v33 = vpop.xlane.xlu2 %159  ;;  %v2257_v47 = vpop.xlane.xlu1 %156 }
  0xac   :  { %v2267_v11 = vpop.xlane.xlu0 %153 }
  0xb0   :  { %490 = vadd.xlane.f32.xlu1 %v489_v4  ;;  %493 = vadd.xlane.f32.xlu2 %v492_v16  ;;  %v501_v4 = vsel %vm97_vm0, %v429_v1, 0.0  ;;  %v2309_v16 = vsub.f32 %v1966_v6, %v302_v2  ;;  %v431_v6 = vmul.f32 %v2304_v57, %v2304_v57  ;;  %v2334_v2 = vsub.f32 %v1994_v20, %v306_v13 }
  0xb1   :  { %288 = vadd.xlane.f32.xlu0 %v287_v58  ;;  %v498_v58 = vsel %vm97_vm0, %v428_v46, 0.0  ;;  %v305_v46 = vmul.f32 %v2222_v40, %v2172_v15  ;;  %v435_v13 = vmul.f32 %v2331_v45, %v2331_v45 }
  0xb2   :  { %v430_v29 = vmul.f32 %v2309_v16, %v2309_v16 }
  0xb3   :  { %v2286_v35 = vpop.xlane.xlu2 %168  ;;  %v2288_v7 = vpop.xlane.xlu1 %165 }
  0xb4   :  { %v2296_v8 = vpop.xlane.xlu0 %162  ;;  %v504_v15 = vsel %vm97_vm0, %v430_v29, 0.0  ;;  %v519_v29 = vsel %vm97_vm0, %v435_v13, 0.0  ;;  %v311_v13 = vmul.f32 %v2222_v40, %v2208_v51 }
  0xb8   :  { %499 = vadd.xlane.f32.xlu1 %v498_v58  ;;  %502 = vadd.xlane.f32.xlu2 %v501_v4  ;;  %v507_v58 = vsel %vm97_vm0, %v431_v6, 0.0  ;;  %v2339_v4 = vsub.f32 %v1978_v12, %v305_v46  ;;  %v434_v12 = vmul.f32 %v2334_v2, %v2334_v2  ;;  %v2364_v46 = vsub.f32 %v2006_v26, %v309_v19 }
  0xb9   :  { %496 = vadd.xlane.f32.xlu0 %v495_v27  ;;  %v310_v27 = vmul.f32 %v2222_v40, %v2210_v34 }
  0xba   :  { %v433_v34 = vmul.f32 %v2339_v4, %v2339_v4 }
  0xbb   :  { %v2316_v14 = vpop.xlane.xlu2 %177  ;;  %v2318_v59 = vpop.xlane.xlu1 %174  ;;  %v2361_v5 = vsub.f32 %v2004_v25, %v310_v27  ;;  %v312_v25 = vmul.f32 %v2222_v40, %v2237_v23 }
  0xbc   :  { %v2326_v1 = vpop.xlane.xlu0 %171  ;;  %v513_v41 = vsel %vm97_vm0, %v433_v34, 0.0 }
  0xbd   :  { %v438_v19 = vmul.f32 %v2361_v5, %v2361_v5 }
  0xbf   :  { %v528_v34 = vsel %vm97_vm0, %v438_v19, 0.0  ;;  %v314_v19 = vmul.f32 %v2222_v40, %v2231_v22 }
  0xc0   :  { %511 = vadd.xlane.f32.xlu2 %v510_v63  ;;  %508 = vadd.xlane.f32.xlu1 %v507_v58  ;;  %v516_v63 = vsel %vm97_vm0, %v434_v12, 0.0  ;;  %v2369_v58 = vsub.f32 %v1990_v18, %v308_v0  ;;  %v437_v18 = vmul.f32 %v2364_v46, %v2364_v46  ;;  %v2394_v0 = vsub.f32 %v2018_v32, %v312_v25 }
  0xc1   :  { %505 = vadd.xlane.f32.xlu0 %v504_v15  ;;  %v313_v15 = vmul.f32 %v2222_v40, %v2233_v17 }
  0xc2   :  { %v436_v17 = vmul.f32 %v2369_v58, %v2369_v58 }
  0xc3   :  { %v2346_v20 = vpop.xlane.xlu2 %186  ;;  %v2348_v39 = vpop.xlane.xlu1 %183  ;;  %v2391_v23 = vsub.f32 %v2016_v31, %v313_v15  ;;  %v315_v31 = vmul.f32 %v2222_v40, %v2267_v11 }
  0xc4   :  { %v2356_v6 = vpop.xlane.xlu0 %180  ;;  %v522_v51 = vsel %vm97_vm0, %v436_v17, 0.0 }
  0xc5   :  { %v441_v25 = vmul.f32 %v2391_v23, %v2391_v23 }
  0xc7   :  { %v537_v17 = vsel %vm97_vm0, %v441_v25, 0.0  ;;  %v317_v25 = vmul.f32 %v2222_v40, %v2255_v33 }
  0xc8   :  { %520 = vadd.xlane.f32.xlu2 %v519_v29  ;;  %517 = vadd.xlane.f32.xlu1 %v516_v63  ;;  %v525_v29 = vsel %vm97_vm0, %v437_v18, 0.0  ;;  %v2399_v63 = vsub.f32 %v2002_v24, %v311_v13  ;;  %v440_v24 = vmul.f32 %v2394_v0, %v2394_v0  ;;  %v2424_v13 = vsub.f32 %v2030_v38, %v315_v31 }
  0xc9   :  { %514 = vadd.xlane.f32.xlu0 %v513_v41  ;;  %v316_v41 = vmul.f32 %v2222_v40, %v2257_v47 }
  0xca   :  { %v439_v47 = vmul.f32 %v2399_v63, %v2399_v63 }
  0xcb   :  { %v2376_v26 = vpop.xlane.xlu2 %195  ;;  %v2378_v27 = vpop.xlane.xlu1 %192  ;;  %v2421_v11 = vsub.f32 %v2028_v37, %v316_v41  ;;  %v318_v37 = vmul.f32 %v2222_v40, %v2296_v8 }
  0xcc   :  { %v2386_v12 = vpop.xlane.xlu0 %189  ;;  %v531_v22 = vsel %vm97_vm0, %v439_v47, 0.0 }
  0xcd   :  { %v444_v31 = vmul.f32 %v2421_v11, %v2421_v11 }
  0xcf   :  { %v546_v47 = vsel %vm97_vm0, %v444_v31, 0.0  ;;  %v320_v31 = vmul.f32 %v2222_v40, %v2286_v35 }
  0xd0   :  { %529 = vadd.xlane.f32.xlu2 %v528_v34  ;;  %526 = vadd.xlane.f32.xlu1 %v525_v29  ;;  %v534_v34 = vsel %vm97_vm0, %v440_v24, 0.0  ;;  %v2429_v29 = vsub.f32 %v2014_v30, %v314_v19  ;;  %v443_v30 = vmul.f32 %v2424_v13, %v2424_v13  ;;  %v2454_v19 = vsub.f32 %v2042_v44, %v318_v37 }
  0xd1   :  { %523 = vadd.xlane.f32.xlu0 %v522_v51  ;;  %v319_v51 = vmul.f32 %v2222_v40, %v2288_v7 }
  0xd2   :  { %v442_v7 = vmul.f32 %v2429_v29, %v2429_v29 }
  0xd3   :  { %v2406_v32 = vpop.xlane.xlu2 %204  ;;  %v2408_v15 = vpop.xlane.xlu1 %201  ;;  %v2451_v8 = vsub.f32 %v2040_v43, %v319_v51  ;;  %v321_v43 = vmul.f32 %v2222_v40, %v2326_v1 }
  0xd4   :  { %v2416_v18 = vpop.xlane.xlu0 %198  ;;  %v540_v33 = vsel %vm97_vm0, %v442_v7, 0.0 }
  0xd5   :  { %v447_v37 = vmul.f32 %v2451_v8, %v2451_v8 }
  0xd7   :  { %v555_v7 = vsel %vm97_vm0, %v447_v37, 0.0  ;;  %v323_v37 = vmul.f32 %v2222_v40, %v2316_v14 }
  0xd8   :  { %538 = vadd.xlane.f32.xlu2 %v537_v17  ;;  %535 = vadd.xlane.f32.xlu1 %v534_v34  ;;  %v543_v17 = vsel %vm97_vm0, %v443_v30, 0.0  ;;  %v2459_v34 = vsub.f32 %v2026_v36, %v317_v25  ;;  %v446_v36 = vmul.f32 %v2454_v19, %v2454_v19  ;;  %v2484_v25 = vsub.f32 %v2054_v50, %v321_v43 }
  0xd9   :  { %532 = vadd.xlane.f32.xlu0 %v531_v22  ;;  %v322_v22 = vmul.f32 %v2222_v40, %v2318_v59 }
  0xda   :  { %v445_v59 = vmul.f32 %v2459_v34, %v2459_v34 }
  0xdb   :  { %v2436_v38 = vpop.xlane.xlu2 %213  ;;  %v2438_v41 = vpop.xlane.xlu1 %210  ;;  %v2481_v1 = vsub.f32 %v2052_v49, %v322_v22  ;;  %v324_v49 = vmul.f32 %v2222_v40, %v2356_v6 }
  0xdc   :  { %v2446_v24 = vpop.xlane.xlu0 %207  ;;  %v549_v35 = vsel %vm97_vm0, %v445_v59, 0.0 }
  0xdd   :  { %v450_v43 = vmul.f32 %v2481_v1, %v2481_v1 }
  0xdf   :  { %v564_v59 = vsel %vm97_vm0, %v450_v43, 0.0  ;;  %v326_v43 = vmul.f32 %v2222_v40, %v2346_v20 }
  0xe0   :  { %547 = vadd.xlane.f32.xlu2 %v546_v47  ;;  %544 = vadd.xlane.f32.xlu1 %v543_v17  ;;  %v552_v47 = vsel %vm97_vm0, %v446_v36, 0.0  ;;  %v2489_v17 = vsub.f32 %v2038_v42, %v320_v31  ;;  %v449_v42 = vmul.f32 %v2484_v25, %v2484_v25  ;;  %v2514_v31 = vsub.f32 %v2066_v56, %v324_v49 }
  0xe1   :  { %541 = vadd.xlane.f32.xlu0 %v540_v33  ;;  %v325_v33 = vmul.f32 %v2222_v40, %v2348_v39 }
  0xe2   :  { %4284 = vst [vmem:[#allocation38_spill] sm:$0xff] %v2489_v17  ;;  %v448_v39 = vmul.f32 %v2489_v17, %v2489_v17 }
  0xe3   :  { %v2466_v44 = vpop.xlane.xlu2 %222  ;;  %v2468_v51 = vpop.xlane.xlu1 %219  ;;  %v2511_v6 = vsub.f32 %v2064_v55, %v325_v33  ;;  %4286 = vst [vmem:[#allocation40_spill] sm:$0xff] %v2514_v31  ;;  %v327_v55 = vmul.f32 %v2222_v40, %v2386_v12 }
  0xe4   :  { %v2476_v30 = vpop.xlane.xlu0 %216  ;;  %v558_v14 = vsel %vm97_vm0, %v448_v39, 0.0 }
  0xe5   :  { %4285 = vst [vmem:[#allocation39_spill] sm:$0xff] %v2511_v6  ;;  %v453_v49 = vmul.f32 %v2511_v6, %v2511_v6 }
  0xe7   :  { %v573_v39 = vsel %vm97_vm0, %v453_v49, 0.0  ;;  %v329_v49 = vmul.f32 %v2222_v40, %v2376_v26 }
  0xe8   :  { %556 = vadd.xlane.f32.xlu2 %v555_v7  ;;  %553 = vadd.xlane.f32.xlu1 %v552_v47  ;;  %v561_v7 = vsel %vm97_vm0, %v449_v42, 0.0  ;;  %v2519_v47 = vsub.f32 %v2050_v48, %v323_v37  ;;  %v452_v48 = vmul.f32 %v2514_v31, %v2514_v31  ;;  %v2544_v37 = vsub.f32 %v2078_v62, %v327_v55 }
  0xe9   :  { %550 = vadd.xlane.f32.xlu0 %v549_v35  ;;  %v328_v35 = vmul.f32 %v2222_v40, %v2378_v27 }
  0xea   :  { %4287 = vst [vmem:[#allocation41_spill] sm:$0xff] %v2519_v47  ;;  %v451_v27 = vmul.f32 %v2519_v47, %v2519_v47 }
  0xeb   :  { %v2496_v50 = vpop.xlane.xlu2 %231  ;;  %v2498_v22 = vpop.xlane.xlu1 %228  ;;  %v2541_v12 = vsub.f32 %v2076_v61, %v328_v35  ;;  %4289 = vst [vmem:[#allocation43_spill] sm:$0xff] %v2544_v37  ;;  %v330_v61 = vmul.f32 %v2222_v40, %v2416_v18 }
  0xec   :  { %v2506_v36 = vpop.xlane.xlu0 %225  ;;  %v567_v20 = vsel %vm97_vm0, %v451_v27, 0.0 }
  0xed   :  { %4288 = vst [vmem:[#allocation42_spill] sm:$0xff] %v2541_v12  ;;  %v456_v55 = vmul.f32 %v2541_v12, %v2541_v12 }
  0xef   :  { %v582_v27 = vsel %vm97_vm0, %v456_v55, 0.0  ;;  %v332_v55 = vmul.f32 %v2222_v40, %v2406_v32 }
  0xf0   :  { %565 = vadd.xlane.f32.xlu2 %v564_v59  ;;  %562 = vadd.xlane.f32.xlu1 %v561_v7  ;;  %v570_v59 = vsel %vm97_vm0, %v452_v48, 0.0  ;;  %v2549_v7 = vsub.f32 %v2062_v54, %v326_v43  ;;  %v455_v54 = vmul.f32 %v2544_v37, %v2544_v37  ;;  %v2574_v43 = vsub.f32 %v2090_v10, %v330_v61 }
  0xf1   :  { %559 = vadd.xlane.f32.xlu0 %v558_v14  ;;  %v331_v14 = vmul.f32 %v2222_v40, %v2408_v15 }
  0xf2   :  { %4290 = vst [vmem:[#allocation44_spill] sm:$0xff] %v2549_v7  ;;  %v454_v15 = vmul.f32 %v2549_v7, %v2549_v7 }
  0xf3   :  { %v2526_v56 = vpop.xlane.xlu2 %240  ;;  %v2528_v33 = vpop.xlane.xlu1 %237  ;;  %v2571_v18 = vsub.f32 %v2088_v9, %v331_v14  ;;  %4292 = vst [vmem:[#allocation46_spill] sm:$0xff] %v2574_v43  ;;  %v333_v9 = vmul.f32 %v2222_v40, %v2446_v24 }
  0xf4   :  { %v2536_v42 = vpop.xlane.xlu0 %234  ;;  %v576_v26 = vsel %vm97_vm0, %v454_v15, 0.0  ;;  %v4296_v15 = vld [vmem:[#allocation11_spill] sm:$0xff] }
  0xf5   :  { %4291 = vst [vmem:[#allocation45_spill] sm:$0xff] %v2571_v18  ;;  %v459_v61 = vmul.f32 %v2571_v18, %v2571_v18  ;;  %v4298_v18 = vld [vmem:[#allocation8_spill] sm:$0xff] }
  0xf8   :  { %574 = vadd.xlane.f32.xlu2 %v573_v39  ;;  %571 = vadd.xlane.f32.xlu1 %v570_v59  ;;  %v579_v39 = vsel %vm97_vm0, %v455_v54, 0.0  ;;  %v2579_v59 = vsub.f32 %v2074_v60, %v329_v49  ;;  %v458_v60 = vmul.f32 %v2574_v43, %v2574_v43  ;;  %v4294_v49 = vld [vmem:[#allocation10_spill] sm:$0xff]  ;;  %v2609_v43 = vsub.f32 %v4298_v18, %v332_v55 }
  0xf9   :  { %568 = vadd.xlane.f32.xlu0 %v567_v20  ;;  %v334_v20 = vmul.f32 %v2222_v40, %v2438_v41 }
  0xfa   :  { %4293 = vst [vmem:[#allocation47_spill] sm:$0xff] %v2579_v59  ;;  %v457_v41 = vmul.f32 %v2579_v59, %v2579_v59  ;;  %v337_v59 = vmul.f32 %v2222_v40, %v2468_v51  ;;  %v460_v51 = vmul.f32 %v2609_v43, %v2609_v43 }
  0xfb   :  { %v2556_v62 = vpop.xlane.xlu2 %249  ;;  %v2558_v35 = vpop.xlane.xlu1 %246  ;;  %v2601_v24 = vsub.f32 %v4294_v49, %v334_v20  ;;  %4299 = vst [vmem:[#allocation8_spill] sm:$0xff] %v2609_v43  ;;  %v336_v20 = vmul.f32 %v2222_v40, %v2476_v30  ;;  %v340_v43 = vmul.f32 %v2222_v40, %v2498_v22 }
  0xfc   :  { %v2566_v48 = vpop.xlane.xlu0 %243  ;;  %v585_v32 = vsel %vm97_vm0, %v457_v41, 0.0  ;;  %v4300_v41 = vld [vmem:[#allocation13_spill] sm:$0xff] }
  0xfd   :  { %4295 = vst [vmem:[#allocation10_spill] sm:$0xff] %v2601_v24  ;;  %v2631_v30 = vsub.f32 %v4300_v41, %v337_v59  ;;  %v339_v59 = vmul.f32 %v2222_v40, %v2506_v36  ;;  %v341_v36 = vmul.f32 %v2222_v40, %v2496_v50 }
  0xff   :  { %4301 = vst [vmem:[#allocation13_spill] sm:$0xff] %v2631_v30 }
 0x100   :  { %583 = vadd.xlane.f32.xlu2 %v582_v27  ;;  %580 = vadd.xlane.f32.xlu1 %v579_v39  ;;  %v2604_v27 = vsub.f32 %v4296_v15, %v333_v9  ;;  %v591_v39 = vsel %vm97_vm0, %v459_v61, 0.0  ;;  %v462_v61 = vmul.f32 %v2601_v24, %v2601_v24  ;;  %v4302_v15 = vld [vmem:[#allocation14_spill] sm:$0xff]  ;;  %v4304_v24 = vld [vmem:[#allocation9_spill] sm:$0xff] }
 0x101   :  { %577 = vadd.xlane.f32.xlu0 %v576_v26  ;;  %v588_v26 = vsel %vm97_vm0, %v458_v60, 0.0  ;;  %v335_v60 = vmul.f32 %v2222_v40, %v2436_v38  ;;  %v594_v38 = vsel %vm97_vm0, %v460_v51, 0.0  ;;  %v4306_v51 = vld [vmem:[#allocation16_spill] sm:$0xff] }
 0x102   :  { %4297 = vst [vmem:[#allocation11_spill] sm:$0xff] %v2604_v27  ;;  %v461_v18 = vmul.f32 %v2604_v27, %v2604_v27 }
 0x103   :  { %v2586_v10 = vpop.xlane.xlu2 %258  ;;  %v2588_v14 = vpop.xlane.xlu1 %255  ;;  %v2639_v27 = vsub.f32 %v4304_v24, %v335_v60 }
 0x104   :  { %v2596_v54 = vpop.xlane.xlu0 %252 }
 0x105   :  { %4305 = vst [vmem:[#allocation9_spill] sm:$0xff] %v2639_v27  ;;  %v463_v22 = vmul.f32 %v2639_v27, %v2639_v27  ;;  %v346_v27 = vmul.f32 %v2222_v40, %v2558_v35 }
 0x108   :  { %592 = vadd.xlane.f32.xlu2 %v591_v39  ;;  %589 = vadd.xlane.f32.xlu1 %v588_v26  ;;  %v2634_v39 = vsub.f32 %v4302_v15, %v336_v20  ;;  %v600_v26 = vsel %vm97_vm0, %v462_v61, 0.0  ;;  %v465_v61 = vmul.f32 %v2631_v30, %v2631_v30  ;;  %v2663_v15 = vsub.f32 %v4306_v51, %v340_v43  ;;  %v4310_v51 = vld [vmem:[#allocation12_spill] sm:$0xff] }
 0x109   :  { %586 = vadd.xlane.f32.xlu0 %v585_v32  ;;  %v597_v32 = vsel %vm97_vm0, %v461_v18, 0.0  ;;  %v338_v18 = vmul.f32 %v2222_v40, %v2466_v44  ;;  %v342_v44 = vmul.f32 %v2222_v40, %v2536_v42  ;;  %v4314_v42 = vld [vmem:[#allocation19_spill] sm:$0xff] }
 0x10a   :  { %4303 = vst [vmem:[#allocation14_spill] sm:$0xff] %v2634_v39  ;;  %v464_v24 = vmul.f32 %v2634_v39, %v2634_v39  ;;  %v609_v50 = vsel %vm97_vm0, %v465_v61, 0.0  ;;  %v468_v35 = vmul.f32 %v2663_v15, %v2663_v15  ;;  %v4316_v61 = vld [vmem:[#allocation18_spill] sm:$0xff] }
 0x10b   :  { %v2616_v9 = vpop.xlane.xlu2 %267  ;;  %v2618_v49 = vpop.xlane.xlu1 %264  ;;  %4307 = vst [vmem:[#allocation16_spill] sm:$0xff] %v2663_v15  ;;  %v2679_v30 = vsub.f32 %v4310_v51, %v338_v18 }
 0x10c   :  { %v2626_v55 = vpop.xlane.xlu0 %261  ;;  %v606_v43 = vsel %vm97_vm0, %v464_v24, 0.0  ;;  %v4318_v24 = vld [vmem:[#allocation20_spill] sm:$0xff] }
 0x10d   :  { %4311 = vst [vmem:[#allocation12_spill] sm:$0xff] %v2679_v30  ;;  %v2694_v18 = vsub.f32 %v4318_v24, %v342_v44  ;;  %v349_v44 = vmul.f32 %v2222_v40, %v2588_v14  ;;  %v350_v24 = vmul.f32 %v2222_v40, %v2586_v10  ;;  %v352_v10 = vmul.f32 %v2222_v40, %v2618_v49 }
 0x10f   :  { %4319 = vst [vmem:[#allocation20_spill] sm:$0xff] %v2694_v18 }
 0x110   :  { %601 = vadd.xlane.f32.xlu2 %v600_v26  ;;  %598 = vadd.xlane.f32.xlu1 %v597_v32  ;;  %v343_v26 = vmul.f32 %v2222_v40, %v2528_v33  ;;  %v344_v32 = vmul.f32 %v2222_v40, %v2526_v56  ;;  %v603_v33 = vsel %vm97_vm0, %v463_v22, 0.0  ;;  %v4312_v56 = vld [vmem:[#allocation15_spill] sm:$0xff]  ;;  %v347_v22 = vmul.f32 %v2222_v40, %v2556_v62 }
 0x111   :  { %595 = vadd.xlane.f32.xlu0 %v594_v38  ;;  %v4308_v38 = vld [vmem:[#allocation17_spill] sm:$0xff]  ;;  %v2683_v7 = vsub.f32 %v4312_v56, %v341_v36  ;;  %v345_v36 = vmul.f32 %v2222_v40, %v2566_v48  ;;  %v618_v62 = vsel %vm97_vm0, %v468_v35, 0.0 }
 0x112   :  { %v2672_v39 = vsub.f32 %v4308_v38, %v339_v59  ;;  %v2686_v59 = vsub.f32 %v4314_v42, %v343_v26  ;;  %v2691_v38 = vsub.f32 %v4316_v61, %v344_v32  ;;  %v466_v32 = vmul.f32 %v2679_v30, %v2679_v30  ;;  %v4322_v42 = vld [vmem:[#allocation21_spill] sm:$0xff]  ;;  %v4324_v30 = vld [vmem:[#allocation23_spill] sm:$0xff] }
 0x113   :  { %v2646_v20 = vpop.xlane.xlu2 %276  ;;  %v2648_v41 = vpop.xlane.xlu1 %273  ;;  %4313 = vst [vmem:[#allocation15_spill] sm:$0xff] %v2683_v7  ;;  %v2715_v61 = vsub.f32 %v4322_v42, %v347_v22  ;;  %v2724_v35 = vsub.f32 %v4324_v30, %v345_v36  ;;  %v4328_v36 = vld [vmem:[#allocation24_spill] sm:$0xff] }
 0x114   :  { %v2656_v60 = vpop.xlane.xlu0 %270  ;;  %4309 = vst [vmem:[#allocation17_spill] sm:$0xff] %v2672_v39  ;;  %v471_v48 = vmul.f32 %v2686_v59, %v2686_v59  ;;  %v472_v14 = vmul.f32 %v2691_v38, %v2691_v38  ;;  %v612_v42 = vsel %vm97_vm0, %v466_v32, 0.0 }
 0x115   :  { %4315 = vst [vmem:[#allocation19_spill] sm:$0xff] %v2686_v59  ;;  %v475_v49 = vmul.f32 %v2715_v61, %v2715_v61 }
 0x116   :  { %4317 = vst [vmem:[#allocation18_spill] sm:$0xff] %v2691_v38 }
 0x117   :  { %4323 = vst [vmem:[#allocation21_spill] sm:$0xff] %v2715_v61  ;;  %v4334_v61 = vld [vmem:[#allocation27_spill] sm:$0xff] }
 0x118   :  { %610 = vadd.xlane.f32.xlu2 %v609_v50  ;;  %607 = vadd.xlane.f32.xlu1 %v606_v43  ;;  %v4320_v50 = vld [vmem:[#allocation22_spill] sm:$0xff]  ;;  %4325 = vst [vmem:[#allocation23_spill] sm:$0xff] %v2724_v35 }
 0x119   :  { %604 = vadd.xlane.f32.xlu0 %v603_v33  ;;  %v2699_v43 = vsub.f32 %v4320_v50, %v346_v27  ;;  %v467_v33 = vmul.f32 %v2672_v39, %v2672_v39  ;;  %v469_v27 = vmul.f32 %v2683_v7, %v2683_v7  ;;  %v470_v50 = vmul.f32 %v2694_v18, %v2694_v18  ;;  %v4326_v18 = vld [vmem:[#allocation25_spill] sm:$0xff] }
 0x11a   :  { %v348_v7 = vmul.f32 %v2222_v40, %v2596_v54  ;;  %v2735_v38 = vsub.f32 %v4326_v18, %v349_v44  ;;  %v627_v54 = vsel %vm97_vm0, %v471_v48, 0.0  ;;  %v2744_v39 = vsel %vm97_vm0, %v472_v14, 0.0 }
 0x11b   :  { %4321 = vst [vmem:[#allocation22_spill] sm:$0xff] %v2699_v43  ;;  %v286_v26 = vpop.xlane.xlu2 %285  ;;  %v283_v51 = vpop.xlane.xlu1 %282  ;;  %v615_v59 = vsel %vm97_vm0, %v467_v33, 0.0  ;;  %v474_v22 = vmul.f32 %v2699_v43, %v2699_v43  ;;  %v621_v30 = vsel %vm97_vm0, %v469_v27, 0.0  ;;  %v2740_v33 = vsub.f32 %v4328_v36, %v350_v24  ;;  %v4332_v24 = vld [vmem:[#allocation28_spill] sm:$0xff] }
 0x11c   :  { %v280_v56 = vpop.xlane.xlu0 %279  ;;  %4327 = vst [vmem:[#allocation25_spill] sm:$0xff] %v2735_v38  ;;  %v624_v43 = vsel %vm97_vm0, %v470_v50, 0.0  ;;  %v353_v18 = vmul.f32 %v2222_v40, %v2616_v9  ;;  %v473_v48 = vmul.f32 %v2724_v35, %v2724_v35  ;;  %v2757_v50 = vsub.f32 %v4332_v24, %v352_v10 }
 0x11d   :  { %4329 = vst [vmem:[#allocation24_spill] sm:$0xff] %v2740_v33  ;;  %v636_v27 = vsel %vm97_vm0, %v474_v22, 0.0  ;;  %v351_v14 = vmul.f32 %v2222_v40, %v2626_v55  ;;  %v356_v9 = vmul.f32 %v2222_v40, %v2646_v20  ;;  %v355_v22 = vmul.f32 %v2222_v40, %v2648_v41 }
 0x11e   :  { %4333 = vst [vmem:[#allocation28_spill] sm:$0xff] %v2757_v50  ;;  %v477_v10 = vmul.f32 %v2735_v38, %v2735_v38  ;;  %v358_v24 = vmul.f32 %v2222_v40, %v283_v51  ;;  %v2779_v20 = vsub.f32 %v4334_v61, %v353_v18  ;;  %v359_v41 = vmul.f32 %v2222_v40, %v286_v26  ;;  %v4336_v38 = vld [vmem:[#allocation29_spill] sm:$0xff]  ;;  %v4338_v18 = vld [vmem:[#allocation30_spill] sm:$0xff] }
 0x11f   :  { %v357_v35 = vmul.f32 %v2222_v40, %v280_v56  ;;  %v2786_v15 = vsub.f32 %v4336_v38, %v351_v14  ;;  %v2790_v51 = vsel %vm97_vm0, %v475_v49, 0.0  ;;  %v480_v61 = vmul.f32 %v2757_v50, %v2757_v50  ;;  %v4340_v56 = vld [vmem:[#allocation31_spill] sm:$0xff]  ;;  %v4344_v38 = vld [vmem:[#allocation34_spill] sm:$0xff] }
 0x120   :  { %619 = vadd.xlane.f32.xlu2 %v618_v62  ;;  %616 = vadd.xlane.f32.xlu1 %v615_v59  ;;  %v4330_v59 = vld [vmem:[#allocation26_spill] sm:$0xff]  ;;  %4335 = vst [vmem:[#allocation27_spill] sm:$0xff] %v2779_v20  ;;  %v2795_v26 = vsub.f32 %v4338_v18, %v356_v9  ;;  %v2809_v49 = vsel %vm97_vm0, %v477_v10, 0.0  ;;  %v4346_v9 = vld [vmem:[#allocation33_spill] sm:$0xff]  ;;  %v4348_v18 = vld [vmem:[#allocation35_spill] sm:$0xff] }
 0x121   :  { %613 = vadd.xlane.f32.xlu0 %v612_v42  ;;  %v2749_v32 = vsub.f32 %v4330_v59, %v348_v7  ;;  %v354_v59 = vmul.f32 %v2222_v40, %v2656_v60  ;;  %4337 = vst [vmem:[#allocation29_spill] sm:$0xff] %v2786_v15 }
 0x122   :  { %4339 = vst [vmem:[#allocation30_spill] sm:$0xff] %v2795_v26 }
 0x123   :  { %4331 = vst [vmem:[#allocation26_spill] sm:$0xff] %v2749_v32  ;;  %v491_v44 = vpop.xlane.xlu1 %490  ;;  %v494_v62 = vpop.xlane.xlu2 %493  ;;  %v476_v60 = vmul.f32 %v2749_v32, %v2749_v32 }
 0x124   :  { %v681_v42 = vmul.f32 %v491_v44, %v2222_v40  ;;  %v682_v7 = vmul.f32 %v494_v62, %v2222_v40  ;;  %v289_v36 = vpop.xlane.xlu0 %288  ;;  %v478_v62 = vmul.f32 %v2740_v33, %v2740_v33 }
 0x126   :  { %v2772_v55 = vadd.f32 1e-05, %v681_v42  ;;  %v2774_v44 = vadd.f32 1e-05, %v682_v7  ;;  %v2798_v42 = vsub.f32 %v4340_v56, %v355_v22  ;;  %v4342_v7 = vld [vmem:[#allocation32_spill] sm:$0xff]  ;;  %v2812_v14 = vsel %vm97_vm0, %v478_v62, 0.0 }
 0x127   :  { %v2801_v33 = vsub.f32 %v4342_v7, %v354_v59  ;;  %v2815_v22 = vsub.f32 %v4346_v9, %v359_v41  ;;  %v2818_v59 = vsub.f32 %v4348_v18, %v357_v35  ;;  %v479_v35 = vmul.f32 %v2786_v15, %v2786_v15 }
 0x128   :  { %1739 = vrsqrt.f32 %v2772_v55  ;;  %628 = vadd.xlane.f32.xlu2 %v627_v54  ;;  %625 = vadd.xlane.f32.xlu1 %v624_v43  ;;  %4341 = vst [vmem:[#allocation31_spill] sm:$0xff] %v2798_v42  ;;  %v2805_v43 = vsub.f32 %v4344_v38, %v358_v24  ;;  %v633_v54 = vsel %vm97_vm0, %v473_v48, 0.0  ;;  %v481_v48 = vmul.f32 %v2779_v20, %v2779_v20 }
 0x129   :  { %4343 = vst [vmem:[#allocation32_spill] sm:$0xff] %v2801_v33  ;;  %1741 = vrsqrt.f32 %v2774_v44  ;;  %622 = vadd.xlane.f32.xlu0 %v621_v30  ;;  %v2821_v30 = vsel %vm97_vm0, %v476_v60, 0.0  ;;  %v2828_v38 = vsel %vm97_vm0, %v480_v61, 0.0  ;;  %v483_v60 = vmul.f32 %v2798_v42, %v2798_v42 }
 0x12a   :  { %4345 = vst [vmem:[#allocation34_spill] sm:$0xff] %v2805_v43  ;;  %v482_v9 = vmul.f32 %v2801_v33, %v2801_v33  ;;  %v484_v18 = vmul.f32 %v2795_v26, %v2795_v26  ;;  %v485_v26 = vmul.f32 %v2818_v59, %v2818_v59  ;;  %vm815_vm2 = vweird.f32 %v2772_v55 }
 0x12b   :  { %4347 = vst [vmem:[#allocation33_spill] sm:$0xff] %v2815_v22  ;;  %v500_v56 = vpop.xlane.xlu1 %499  ;;  %v503_v7 = vpop.xlane.xlu2 %502  ;;  %vm825_vm4 = vweird.f32 %v2774_v44 }
 0x12c   :  { %4349 = vst [vmem:[#allocation35_spill] sm:$0xff] %v2818_v59  ;;  %v684_v10 = vmul.f32 %v500_v56, %v2222_v40  ;;  %v685_v24 = vmul.f32 %v503_v7, %v2222_v40  ;;  %v497_v62 = vpop.xlane.xlu0 %496  ;;  %v360_v7 = vmul.f32 %v2222_v40, %v289_v36  ;;  %v487_v36 = vmul.f32 %v2815_v22, %v2815_v22 }
 0x12d   :  { %v683_v41 = vmul.f32 %v497_v62, %v2222_v40  ;;  %v486_v62 = vmul.f32 %v2805_v43, %v2805_v43  ;;  %v2865_v43 = vsel %vm97_vm0, %v481_v48, 0.0  ;;  %v2871_v22 = vsel %vm97_vm0, %v483_v60, 0.0 }
 0x12e   :  { %v2839_v56 = vpop.eup %1739  ;;  %v2842_v61 = vadd.f32 1e-05, %v684_v10  ;;  %v2844_v20 = vadd.f32 1e-05, %v685_v24  ;;  %v2862_v24 = vsel %vm97_vm0, %v479_v35, 0.0  ;;  %v2874_v59 = vsel %vm97_vm0, %v484_v18, 0.0 }
 0x12f   :  { %v2848_v15 = vpop.eup %1741  ;;  %v810_v42 = vmul.f32 %v2839_v56, %v2772_v55  ;;  %v2852_v33 = vadd.f32 1e-05, %v683_v41  ;;  %v2882_v48 = vsel %vm97_vm0, %v482_v9, 0.0  ;;  %v2888_v60 = vsel %vm97_vm0, %v485_v26, 0.0 }
 0x130   :  { %v820_v10 = vmul.f32 %v2848_v15, %v2774_v44  ;;  %1743 = vrsqrt.f32 %v2842_v61  ;;  %637 = vadd.xlane.f32.xlu2 %v636_v27  ;;  %634 = vadd.xlane.f32.xlu1 %v633_v54  ;;  %v2878_v54 = vsub.f32 %v2259_v21, %v360_v7  ;;  %v2891_v18 = vsel %vm97_vm0, %v487_v36, 0.0 }
 0x131   :  { %v811_v41 = vmul.f32 %v2839_v56, %v810_v42  ;;  %1745 = vrsqrt.f32 %v2844_v20  ;;  %631 = vadd.xlane.f32.xlu0 %v2744_v39  ;;  %v2885_v39 = vsel %vm97_vm0, %v486_v62, 0.0  ;;  %vm816_vm3 = vweird.f32 %v2839_v56 }
 0x132   :  { %v821_v27 = vmul.f32 %v2848_v15, %v820_v10  ;;  %4350 = vst [vmem:[#allocation48_spill] sm:$0xff] %v2878_v54  ;;  %1747 = vrsqrt.f32 %v2852_v33  ;;  %vm826_vm5 = vweird.f32 %v2848_v15  ;;  %vm845_vm6 = vweird.f32 %v2842_v61  ;;  %vm817_vm7 = vmor %vm815_vm2, %vm816_vm3 }
 0x133   :  { %v812_v42 = vmul.f32 0.5, %v811_v41  ;;  %v512_v35 = vpop.xlane.xlu2 %511  ;;  %v509_v50 = vpop.xlane.xlu1 %508  ;;  %vm827_vm8 = vmor %vm825_vm4, %vm826_vm5  ;;  %vm855_vm9 = vweird.f32 %v2844_v20  ;;  %vm835_vm14 = vweird.f32 %v2852_v33 }
 0x134   :  { %v822_v21 = vmul.f32 0.5, %v821_v27  ;;  %v688_v7 = vmul.f32 %v512_v35, %v2222_v40  ;;  %v687_v9 = vmul.f32 %v509_v50, %v2222_v40  ;;  %v506_v10 = vpop.xlane.xlu0 %505  ;;  %v2906_v27 = vmul.f32 %v2878_v54, %v2878_v54 }
 0x135   :  { %v813_v41 = vsub.f32 1.5, %v812_v42  ;;  %v686_v62 = vmul.f32 %v506_v10, %v2222_v40 }
 0x136   :  { %v2899_v26 = vpop.eup %1743  ;;  %v823_v32 = vsub.f32 1.5, %v822_v21  ;;  %v2902_v36 = vadd.f32 1e-05, %v688_v7  ;;  %v2914_v10 = vadd.f32 1e-05, %v687_v9 }
 0x137   :  { %v2908_v50 = vpop.eup %1745  ;;  %v814_v42 = vmul.f32 %v2839_v56, %v813_v41  ;;  %v840_v35 = vmul.f32 %v2899_v26, %v2842_v61  ;;  %v2921_v7 = vld [vmem:[%s4182_s1] ss:$0 sm:$0xff]  ;;  %v2931_v9 = vadd.f32 1e-05, %v686_v62  ;;  %vm846_vm10 = vweird.f32 %v2899_v26 }
 0x138   :  { %v2916_v21 = vpop.eup %1747  ;;  %v824_v41 = vmul.f32 %v2848_v15, %v823_v32  ;;  %v850_v54 = vmul.f32 %v2908_v50, %v2844_v20  ;;  %1749 = vrsqrt.f32 %v2902_v36  ;;  %646 = vadd.xlane.f32.xlu2 %v2809_v49  ;;  %643 = vadd.xlane.f32.xlu1 %v2821_v30  ;;  %v2948_v49 = vld [vmem:[%s4183_s2] ss:$0 sm:$0xff]  ;;  %vm856_vm11 = vweird.f32 %v2908_v50  ;;  %vm847_vm13 = vmor %vm845_vm6, %vm846_vm10 }
 0x139   :  { %v818_v37 = vsel %vm817_vm7, %v2839_v56, %v814_v42  ;;  %v841_v32 = vmul.f32 %v2899_v26, %v840_v35  ;;  %v830_v55 = vmul.f32 %v2916_v21, %v2852_v33  ;;  %640 = vadd.xlane.f32.xlu0 %v2790_v51  ;;  %v4351_v62 = vld [vmem:[#allocation36_spill] sm:$0xff]  ;;  %1751 = vrsqrt.f32 %v2914_v10  ;;  %vm857_vm2 = vmor %vm855_vm9, %vm856_vm11 }
 0x13a   :  { %v1449_v30 = vmul.f32 %v818_v37, %v2246_v3  ;;  %v828_v56 = vsel %vm827_vm8, %v2848_v15, %v824_v41  ;;  %v851_v44 = vmul.f32 %v2908_v50, %v850_v54  ;;  %1753 = vrsqrt.f32 %v2931_v9 }
 0x13b   :  { %v1450_v42 = vmul.f32 %v828_v56, %v4351_v62  ;;  %v842_v35 = vmul.f32 0.5, %v841_v32  ;;  %v831_v12 = vmul.f32 %v2916_v21, %v830_v55  ;;  %v521_v51 = vpop.xlane.xlu2 %520  ;;  %v518_v47 = vpop.xlane.xlu1 %517  ;;  %vm836_vm12 = vweird.f32 %v2916_v21 }
 0x13c   :  { %v1516_v31 = vmul.f32 %v2921_v7, %v1449_v30  ;;  %v852_v6 = vmul.f32 0.5, %v851_v44  ;;  %v691_v55 = vmul.f32 %v521_v51, %v2222_v40  ;;  %v690_v30 = vmul.f32 %v518_v47, %v2222_v40  ;;  %v515_v56 = vpop.xlane.xlu0 %514  ;;  %vm837_vm3 = vmor %vm835_vm14, %vm836_vm12 }
 0x13d   :  { %v1517_v3 = vmul.f32 %v2921_v7, %v1450_v42  ;;  %v843_v37 = vsub.f32 1.5, %v842_v35  ;;  %v832_v15 = vmul.f32 0.5, %v831_v12  ;;  %vm885_vm15 = vweird.f32 %v2902_v36 }
 0x13e   :  { %v2962_v54 = vpop.eup %1749  ;;  %v1583_v41 = vadd.f32 %v2948_v49, %v1516_v31  ;;  %v853_v32 = vsub.f32 1.5, %v852_v6  ;;  %v2992_v35 = vadd.f32 1e-05, %v691_v55  ;;  %vm875_vm7 = vweird.f32 %v2914_v10 }
 0x13f   :  { %v1584_v44 = vadd.f32 %v2948_v49, %v1517_v3  ;;  %v844_v62 = vmul.f32 %v2899_v26, %v843_v37  ;;  %v833_v17 = vsub.f32 1.5, %v832_v15  ;;  %v880_v12 = vmul.f32 %v2962_v54, %v2902_v36  ;;  %v2982_v31 = vpop.eup %1751 }
 0x140   :  { %1647 = vst.msk [vmem:[#allocation5] sm:$0xff] %vm97_vm0, %v1583_v41  ;;  %v854_v6 = vmul.f32 %v2908_v50, %v853_v32  ;;  %vm886_vm1 = vweird.f32 %v2962_v54  ;;  %655 = vadd.xlane.f32.xlu2 %v2828_v38  ;;  %652 = vadd.xlane.f32.xlu1 %v2862_v24  ;;  %v2994_v38 = vpop.eup %1753  ;;  %v870_v20 = vmul.f32 %v2982_v31, %v2914_v10  ;;  %v4352_v41 = vld [vmem:[#allocation37_spill] sm:$0xff]  ;;  %1755 = vrsqrt.f32 %v2992_v35 }
 0x141   :  { %1648 = vst.msk [vmem:[#allocation5 + $0x8] sm:$0xff] %vm97_vm0, %v1584_v44  ;;  %v848_v47 = vsel %vm847_vm13, %v2899_v26, %v844_v62  ;;  %v834_v61 = vmul.f32 %v2916_v21, %v833_v17  ;;  %v881_v42 = vmul.f32 %v2962_v54, %v880_v12  ;;  %v3004_v26 = vadd.f32 1e-05, %v690_v30  ;;  %649 = vadd.xlane.f32.xlu0 %v2812_v14  ;;  %vm887_vm5 = vmor %vm885_vm15, %vm886_vm1 }
 0x142   :  { %v1452_v24 = vmul.f32 %v848_v47, %v2275_v52  ;;  %v858_v51 = vsel %vm857_vm2, %v2908_v50, %v854_v6  ;;  %v860_v52 = vmul.f32 %v2994_v38, %v2931_v9  ;;  %v871_v55 = vmul.f32 %v2982_v31, %v870_v20 }
 0x143   :  { %v1453_v17 = vmul.f32 %v858_v51, %v2272_v28  ;;  %v838_v3 = vsel %vm837_vm3, %v2916_v21, %v834_v61  ;;  %v882_v37 = vmul.f32 0.5, %v881_v42  ;;  %v530_v50 = vpop.xlane.xlu2 %529  ;;  %v527_v15 = vpop.xlane.xlu1 %526  ;;  %v689_v30 = vmul.f32 %v515_v56, %v2222_v40 }
 0x144   :  { %v1519_v33 = vmul.f32 %v2921_v7, %v1452_v24  ;;  %v1451_v32 = vmul.f32 %v838_v3, %v4352_v41  ;;  %v861_v28 = vmul.f32 %v2994_v38, %v860_v52  ;;  %v872_v12 = vmul.f32 0.5, %v871_v55  ;;  %v524_v51 = vpop.xlane.xlu0 %523 }
 0x145   :  { %v1520_v14 = vmul.f32 %v2921_v7, %v1453_v17  ;;  %v883_v44 = vsub.f32 1.5, %v882_v37  ;;  %vm876_vm4 = vweird.f32 %v2982_v31  ;;  %1757 = vrsqrt.f32 %v3004_v26 }
 0x146   :  { %v1586_v21 = vadd.f32 %v2948_v49, %v1519_v33  ;;  %v1518_v62 = vmul.f32 %v2921_v7, %v1451_v32  ;;  %v862_v61 = vmul.f32 0.5, %v861_v28  ;;  %v873_v42 = vsub.f32 1.5, %v872_v12  ;;  %vm877_vm8 = vmor %vm875_vm7, %vm876_vm4 }
 0x147   :  { %v1587_v6 = vadd.f32 %v2948_v49, %v1520_v14  ;;  %v884_v47 = vmul.f32 %v2962_v54, %v883_v44  ;;  %vm866_vm6 = vweird.f32 %v2994_v38  ;;  %v3031_v24 = vadd.f32 1e-05, %v689_v30 }
 0x148   :  { %1650 = vst.msk [vmem:[#allocation5 + $0x18] sm:$0xff] %vm97_vm0, %v1586_v21  ;;  %v1585_v56 = vadd.f32 %v2948_v49, %v1518_v62  ;;  %664 = vadd.xlane.f32.xlu2 %v2871_v22  ;;  %661 = vadd.xlane.f32.xlu1 %v2882_v48  ;;  %v863_v17 = vsub.f32 1.5, %v862_v61  ;;  %v694_v3 = vmul.f32 %v530_v50, %v2222_v40  ;;  %v3045_v22 = vpop.eup %1755  ;;  %vm865_vm9 = vweird.f32 %v2931_v9 }
 0x149   :  { %1651 = vst.msk [vmem:[#allocation5 + $0x20] sm:$0xff] %vm97_vm0, %v1587_v6  ;;  %v888_v20 = vsel %vm887_vm5, %v2962_v54, %v884_v47  ;;  %v693_v36 = vmul.f32 %v527_v15, %v2222_v40  ;;  %v874_v52 = vmul.f32 %v2982_v31, %v873_v42  ;;  %1759 = vrsqrt.f32 %v3031_v24  ;;  %658 = vadd.xlane.f32.xlu0 %v2865_v43  ;;  %vm867_vm10 = vmor %vm865_vm9, %vm866_vm6 }
 0x14a   :  { %1649 = vst.msk [vmem:[#allocation5 + $0x10] sm:$0xff] %vm97_vm0, %v1585_v56  ;;  %v1456_v37 = vmul.f32 %v888_v20, %v2301_v53  ;;  %v864_v48 = vmul.f32 %v2994_v38, %v863_v17  ;;  %v3051_v54 = vadd.f32 1e-05, %v694_v3  ;;  %v910_v43 = vmul.f32 %v3045_v22, %v2992_v35 }
 0x14b   :  { %v3053_v53 = vadd.f32 1e-05, %v693_v36  ;;  %v539_v50 = vpop.xlane.xlu2 %538  ;;  %v878_v15 = vsel %vm877_vm8, %v2982_v31, %v874_v52  ;;  %v692_v33 = vmul.f32 %v524_v51, %v2222_v40  ;;  %v536_v41 = vpop.xlane.xlu1 %535  ;;  %v678_v31 = vsel %vm97_vm0, %v2906_v27, 0.0 }
 0x14c   :  { %v1523_v10 = vmul.f32 %v2921_v7, %v1456_v37  ;;  %v3062_v32 = vpop.eup %1757  ;;  %v1455_v9 = vmul.f32 %v878_v15, %v2304_v57  ;;  %v868_v55 = vsel %vm867_vm10, %v2994_v38, %v864_v48  ;;  %1761 = vrsqrt.f32 %v3051_v54  ;;  %v533_v51 = vpop.xlane.xlu0 %532 }
 0x14d   :  { %v1454_v14 = vmul.f32 %v868_v55, %v2309_v16  ;;  %v911_v44 = vmul.f32 %v3045_v22, %v910_v43  ;;  %v900_v28 = vmul.f32 %v3062_v32, %v3004_v26  ;;  %vm915_vm11 = vweird.f32 %v2992_v35 }
 0x14e   :  { %v1590_v30 = vadd.f32 %v2948_v49, %v1523_v10  ;;  %v1522_v21 = vmul.f32 %v2921_v7, %v1455_v9  ;;  %vm905_vm12 = vweird.f32 %v3004_v26  ;;  %1763 = vrsqrt.f32 %v3053_v53 }
 0x14f   :  { %v3078_v57 = vpop.eup %1759  ;;  %v1521_v27 = vmul.f32 %v2921_v7, %v1454_v14  ;;  %v912_v16 = vmul.f32 0.5, %v911_v44  ;;  %v901_v38 = vmul.f32 %v3062_v32, %v900_v28  ;;  %v3083_v62 = vadd.f32 1e-05, %v692_v33 }
 0x150   :  { %1654 = vst.msk [vmem:[#allocation5 + $0x38] sm:$0xff] %vm97_vm0, %v1590_v30  ;;  %673 = vadd.xlane.f32.xlu2 %v2885_v39  ;;  %670 = vadd.xlane.f32.xlu1 %v2888_v60  ;;  %v1589_v12 = vadd.f32 %v2948_v49, %v1522_v21  ;;  %vm916_vm13 = vweird.f32 %v3045_v22  ;;  %v890_v6 = vmul.f32 %v3078_v57, %v3031_v24  ;;  %vm895_vm14 = vweird.f32 %v3031_v24 }
 0x151   :  { %v697_v47 = vmul.f32 %v539_v50, %v2222_v40  ;;  %v1588_v61 = vadd.f32 %v2948_v49, %v1521_v27  ;;  %v913_v56 = vsub.f32 1.5, %v912_v16  ;;  %v902_v42 = vmul.f32 0.5, %v901_v38  ;;  %667 = vadd.xlane.f32.xlu0 %v2874_v59  ;;  %vm917_vm1 = vmor %vm915_vm11, %vm916_vm13 }
 0x152   :  { %1765 = vrsqrt.f32 %v3083_v62  ;;  %v3095_v39 = vpop.eup %1761  ;;  %1653 = vst.msk [vmem:[#allocation5 + $0x30] sm:$0xff] %vm97_vm0, %v1589_v12  ;;  %v891_v60 = vmul.f32 %v3078_v57, %v890_v6  ;;  %v696_v17 = vmul.f32 %v536_v41, %v2222_v40  ;;  %vm906_vm15 = vweird.f32 %v3062_v32 }
 0x153   :  { %v3100_v20 = vadd.f32 1e-05, %v697_v47  ;;  %1652 = vst.msk [vmem:[#allocation5 + $0x28] sm:$0xff] %vm97_vm0, %v1588_v61  ;;  %v914_v3 = vmul.f32 %v3045_v22, %v913_v56  ;;  %v903_v36 = vsub.f32 1.5, %v902_v42  ;;  %v940_v59 = vmul.f32 %v3095_v39, %v3051_v54  ;;  %v3108_v37 = vpop.xlane.xlu2 %547  ;;  %v3126_v35 = vpop.xlane.xlu1 %544  ;;  %vm907_vm4 = vmor %vm905_vm12, %vm906_vm15 }
 0x154   :  { %v3110_v52 = vpop.eup %1763  ;;  %v892_v48 = vmul.f32 0.5, %v891_v60  ;;  %vm945_vm2 = vweird.f32 %v3051_v54  ;;  %v3118_v50 = vadd.f32 1e-05, %v696_v17  ;;  %vm935_vm3 = vweird.f32 %v3053_v53 }
 0x155   :  { %1767 = vrsqrt.f32 %v3100_v20  ;;  %v918_v10 = vsel %vm917_vm1, %v3045_v22, %v914_v3  ;;  %v904_v15 = vmul.f32 %v3062_v32, %v903_v36  ;;  %v941_v43 = vmul.f32 %v3095_v39, %v940_v59 }
 0x156   :  { %v930_v33 = vmul.f32 %v3110_v52, %v3053_v53  ;;  %v1459_v41 = vmul.f32 %v918_v10, %v2331_v45  ;;  %v893_v9 = vsub.f32 1.5, %v892_v48  ;;  %vm896_vm5 = vweird.f32 %v3078_v57 }
 0x157   :  { %1769 = vrsqrt.f32 %v3118_v50  ;;  %v908_v55 = vsel %vm907_vm4, %v3062_v32, %v904_v15  ;;  %v942_v30 = vmul.f32 0.5, %v941_v43  ;;  %vm946_vm6 = vweird.f32 %v3095_v39  ;;  %vm897_vm8 = vmor %vm895_vm14, %vm896_vm5 }
 0x158   :  { %v3135_v22 = vpop.eup %1765  ;;  %v931_v14 = vmul.f32 %v3110_v52, %v930_v33  ;;  %679 = vadd.xlane.f32.xlu1 %v678_v31  ;;  %v1526_v45 = vmul.f32 %v2921_v7, %v1459_v41  ;;  %v1458_v26 = vmul.f32 %v908_v55, %v2334_v2  ;;  %v894_v44 = vmul.f32 %v3078_v57, %v893_v9  ;;  %vm947_vm11 = vmor %vm945_vm2, %vm946_vm6 }
 0x159   :  { %v920_v28 = vmul.f32 %v3135_v22, %v3083_v62  ;;  %vm925_vm7 = vweird.f32 %v3083_v62  ;;  %v943_v32 = vsub.f32 1.5, %v942_v30  ;;  %vm936_vm9 = vweird.f32 %v3110_v52  ;;  %676 = vadd.xlane.f32.xlu0 %v2891_v18  ;;  %v542_v18 = vpop.xlane.xlu0 %541 }
 0x15a   :  { %v932_v21 = vmul.f32 0.5, %v931_v14  ;;  %v695_v31 = vmul.f32 %v533_v51, %v2222_v40  ;;  %v1593_v2 = vadd.f32 %v2948_v49, %v1526_v45  ;;  %v1525_v16 = vmul.f32 %v2921_v7, %v1458_v26  ;;  %vm937_vm13 = vmor %vm935_vm3, %vm936_vm9 }
 0x15b   :  { %v3151_v27 = vpop.eup %1767  ;;  %v898_v38 = vsel %vm897_vm8, %v3078_v57, %v894_v44  ;;  %v921_v12 = vmul.f32 %v3135_v22, %v920_v28  ;;  %v944_v6 = vmul.f32 %v3095_v39, %v943_v32  ;;  %vm975_vm10 = vweird.f32 %v3100_v20  ;;  %v557_v36 = vpop.xlane.xlu2 %556 }
 0x15c   :  { %v1457_v24 = vmul.f32 %v898_v38, %v2339_v4  ;;  %v933_v47 = vsub.f32 1.5, %v932_v21  ;;  %v970_v61 = vmul.f32 %v3151_v27, %v3100_v20  ;;  %1657 = vst.msk [vmem:[#allocation5 + $0x50] sm:$0xff] %vm97_vm0, %v1593_v2  ;;  %v1592_v42 = vadd.f32 %v2948_v49, %v1525_v16  ;;  %v554_v43 = vpop.xlane.xlu1 %553 }
 0x15d   :  { %v3162_v56 = vpop.eup %1769  ;;  %v922_v4 = vmul.f32 0.5, %v921_v12  ;;  %vm926_vm12 = vweird.f32 %v3135_v22  ;;  %v3171_v57 = vadd.f32 1e-05, %v695_v31  ;;  %v948_v60 = vsel %vm947_vm11, %v3095_v39, %v944_v6 }
 0x15e   :  { %v1524_v51 = vmul.f32 %v2921_v7, %v1457_v24  ;;  %v934_v17 = vmul.f32 %v3110_v52, %v933_v47  ;;  %v971_v3 = vmul.f32 %v3151_v27, %v970_v61  ;;  %1656 = vst.msk [vmem:[#allocation5 + $0x48] sm:$0xff] %vm97_vm0, %v1592_v42  ;;  %v1462_v59 = vmul.f32 %v948_v60, %v2361_v5  ;;  %vm927_vm15 = vmor %vm925_vm7, %vm926_vm12 }
 0x15f   :  { %v923_v54 = vsub.f32 1.5, %v922_v4  ;;  %vm976_vm14 = vweird.f32 %v3151_v27  ;;  %v960_v39 = vmul.f32 %v3162_v56, %v3118_v50  ;;  %1771 = vrsqrt.f32 %v3171_v57 }
 0x160   :  { %v1591_v48 = vadd.f32 %v2948_v49, %v1524_v51  ;;  %v938_v10 = vsel %vm937_vm13, %v3110_v52, %v934_v17  ;;  %v972_v15 = vmul.f32 0.5, %v971_v3  ;;  %v1529_v5 = vmul.f32 %v2921_v7, %v1462_v59  ;;  %vm977_vm2 = vmor %vm975_vm10, %vm976_vm14 }
 0x161   :  { %v1461_v33 = vmul.f32 %v938_v10, %v2364_v46  ;;  %v924_v53 = vmul.f32 %v3135_v22, %v923_v54  ;;  %v961_v41 = vmul.f32 %v3162_v56, %v960_v39  ;;  %vm966_vm1 = vweird.f32 %v3162_v56  ;;  %v551_v2 = vpop.xlane.xlu0 %550 }
 0x162   :  { %1655 = vst.msk [vmem:[#allocation5 + $0x40] sm:$0xff] %vm97_vm0, %v1591_v48  ;;  %v973_v52 = vsub.f32 1.5, %v972_v15  ;;  %v700_v9 = vmul.f32 %v3108_v37, %v2222_v40  ;;  %v699_v46 = vmul.f32 %v3126_v35, %v2222_v40  ;;  %v1596_v55 = vadd.f32 %v2948_v49, %v1529_v5 }
 0x163   :  { %v1528_v30 = vmul.f32 %v2921_v7, %v1461_v33  ;;  %v928_v14 = vsel %vm927_vm15, %v3135_v22, %v924_v53  ;;  %v962_v45 = vmul.f32 0.5, %v961_v41  ;;  %v698_v22 = vmul.f32 %v542_v18, %v2222_v40  ;;  %v566_v24 = vpop.xlane.xlu2 %565 }
 0x164   :  { %v1460_v26 = vmul.f32 %v928_v14, %v2369_v58  ;;  %v974_v62 = vmul.f32 %v3151_v27, %v973_v52  ;;  %v3208_v44 = vadd.f32 1e-05, %v700_v9  ;;  %v3210_v28 = vadd.f32 1e-05, %v699_v46  ;;  %1660 = vst.msk [vmem:[#allocation5 + $0x68] sm:$0xff] %vm97_vm0, %v1596_v55  ;;  %v563_v42 = vpop.xlane.xlu1 %562 }
 0x165   :  { %v1595_v37 = vadd.f32 %v2948_v49, %v1528_v30  ;;  %v963_v35 = vsub.f32 1.5, %v962_v45  ;;  %v703_v58 = vmul.f32 %v557_v36, %v2222_v40  ;;  %v1772_v32 = vpop.eup %1771  ;;  %vm965_vm3 = vweird.f32 %v3118_v50 }
 0x166   :  { %v1527_v21 = vmul.f32 %v2921_v7, %v1460_v26  ;;  %v978_v31 = vsel %vm977_vm2, %v3151_v27, %v974_v62  ;;  %1773 = vrsqrt.f32 %v3208_v44  ;;  %v950_v38 = vmul.f32 %v1772_v32, %v3171_v57  ;;  %vm967_vm4 = vmor %vm965_vm3, %vm966_vm1 }
 0x167   :  { %1659 = vst.msk [vmem:[#allocation5 + $0x60] sm:$0xff] %vm97_vm0, %v1595_v37  ;;  %v1465_v16 = vmul.f32 %v978_v31, %v2391_v23  ;;  %v964_v20 = vmul.f32 %v3162_v56, %v963_v35  ;;  %1775 = vrsqrt.f32 %v3210_v28  ;;  %v3232_v27 = vadd.f32 1e-05, %v698_v22 }
 0x168   :  { %v1594_v12 = vadd.f32 %v2948_v49, %v1527_v21  ;;  %v951_v47 = vmul.f32 %v1772_v32, %v950_v38  ;;  %v3236_v61 = vadd.f32 1e-05, %v703_v58  ;;  %v702_v18 = vmul.f32 %v554_v43, %v2222_v40 }
 0x169   :  { %v1532_v6 = vmul.f32 %v2921_v7, %v1465_v16  ;;  %v968_v23 = vsel %vm967_vm4, %v3162_v56, %v964_v20  ;;  %1777 = vrsqrt.f32 %v3232_v27  ;;  %v701_v3 = vmul.f32 %v551_v2, %v2222_v40  ;;  %v560_v41 = vpop.xlane.xlu0 %559 }
 0x16a   :  { %1658 = vst.msk [vmem:[#allocation5 + $0x58] sm:$0xff] %vm97_vm0, %v1594_v12  ;;  %v1464_v50 = vmul.f32 %v968_v23, %v2394_v0  ;;  %v952_v51 = vmul.f32 0.5, %v951_v47  ;;  %1779 = vrsqrt.f32 %v3236_v61  ;;  %v3247_v17 = vadd.f32 1e-05, %v702_v18 }
 0x16b   :  { %v1599_v4 = vadd.f32 %v2948_v49, %v1532_v6  ;;  %v706_v0 = vmul.f32 %v566_v24, %v2222_v40  ;;  %vm956_vm5 = vweird.f32 %v1772_v32  ;;  %v705_v54 = vmul.f32 %v563_v42, %v2222_v40  ;;  %v3286_v26 = vpop.xlane.xlu2 %574 }
 0x16c   :  { %v3244_v60 = vpop.eup %1773  ;;  %v1531_v56 = vmul.f32 %v2921_v7, %v1464_v50  ;;  %v953_v36 = vsub.f32 1.5, %v952_v51  ;;  %vm955_vm6 = vweird.f32 %v3171_v57  ;;  %1781 = vrsqrt.f32 %v3247_v17  ;;  %v3312_v47 = vpop.xlane.xlu1 %571 }
 0x16d   :  { %1663 = vst.msk [vmem:[#allocation5 + $0x80] sm:$0xff] %vm97_vm0, %v1599_v4  ;;  %v1000_v59 = vmul.f32 %v3244_v60, %v3208_v44  ;;  %v3255_v39 = vpop.eup %1775  ;;  %v3260_v10 = vadd.f32 1e-05, %v701_v3  ;;  %vm1005_vm7 = vweird.f32 %v3208_v44  ;;  %vm957_vm8 = vmor %vm955_vm6, %vm956_vm5  ;;  %vm995_vm9 = vweird.f32 %v3210_v28 }
 0x16e   :  { %v1598_v48 = vadd.f32 %v2948_v49, %v1531_v56  ;;  %v954_v15 = vmul.f32 %v1772_v32, %v953_v36  ;;  %v990_v5 = vmul.f32 %v3255_v39, %v3210_v28  ;;  %v3271_v57 = vadd.f32 1e-05, %v706_v0 }
 0x16f   :  { %v1001_v43 = vmul.f32 %v3244_v60, %v1000_v59  ;;  %v3266_v33 = vpop.eup %1777  ;;  %1783 = vrsqrt.f32 %v3260_v10  ;;  %v3273_v53 = vadd.f32 1e-05, %v705_v54  ;;  %vm985_vm10 = vweird.f32 %v3232_v27 }
 0x170   :  { %1662 = vst.msk [vmem:[#allocation5 + $0x78] sm:$0xff] %vm97_vm0, %v1598_v48  ;;  %v3275_v52 = vpop.eup %1779  ;;  %v958_v9 = vsel %vm957_vm8, %v1772_v32, %v954_v15  ;;  %v991_v55 = vmul.f32 %v3255_v39, %v990_v5  ;;  %v980_v30 = vmul.f32 %v3266_v33, %v3232_v27  ;;  %vm1006_vm11 = vweird.f32 %v3244_v60 }
 0x171   :  { %v1002_v46 = vmul.f32 0.5, %v1001_v43  ;;  %v1463_v14 = vmul.f32 %v958_v9, %v2399_v63  ;;  %v1030_v45 = vmul.f32 %v3275_v52, %v3236_v61  ;;  %vm1035_vm12 = vweird.f32 %v3236_v61  ;;  %vm1007_vm15 = vmor %vm1005_vm7, %vm1006_vm11  ;;  %v569_v36 = vpop.xlane.xlu0 %568 }
 0x172   :  { %v992_v37 = vmul.f32 0.5, %v991_v55  ;;  %v981_v35 = vmul.f32 %v3266_v33, %v980_v30  ;;  %1785 = vrsqrt.f32 %v3271_v57  ;;  %v3290_v22 = vpop.eup %1781  ;;  %vm996_vm13 = vweird.f32 %v3255_v39 }
 0x173   :  { %v1003_v62 = vsub.f32 1.5, %v1002_v46  ;;  %v1530_v58 = vmul.f32 %v2921_v7, %v1463_v14  ;;  %v1031_v63 = vmul.f32 %v3275_v52, %v1030_v45  ;;  %1787 = vrsqrt.f32 %v3273_v53  ;;  %vm997_vm3 = vmor %vm995_vm9, %vm996_vm13  ;;  %v584_v5 = vpop.xlane.xlu2 %583 }
 0x174   :  { %v993_v21 = vsub.f32 1.5, %v992_v37  ;;  %v982_v31 = vmul.f32 0.5, %v981_v35  ;;  %v1020_v2 = vmul.f32 %v3290_v22, %v3247_v17  ;;  %vm1025_vm14 = vweird.f32 %v3247_v17 }
 0x175   :  { %v1004_v32 = vmul.f32 %v3244_v60, %v1003_v62  ;;  %v3300_v16 = vpop.eup %1783  ;;  %v1597_v20 = vadd.f32 %v2948_v49, %v1530_v58  ;;  %vm986_vm1 = vweird.f32 %v3266_v33  ;;  %v1032_v38 = vmul.f32 0.5, %v1031_v63 }
 0x176   :  { %vm1036_vm2 = vweird.f32 %v3275_v52  ;;  %v994_v24 = vmul.f32 %v3255_v39, %v993_v21  ;;  %v983_v6 = vsub.f32 1.5, %v982_v31  ;;  %v1021_v23 = vmul.f32 %v3290_v22, %v1020_v2  ;;  %vm987_vm7 = vmor %vm985_vm10, %vm986_vm1 }
 0x177   :  { %v1008_v12 = vsel %vm1007_vm15, %v3244_v60, %v1004_v32  ;;  %1661 = vst.msk [vmem:[#allocation5 + $0x70] sm:$0xff] %vm97_vm0, %v1597_v20  ;;  %v1033_v44 = vsub.f32 1.5, %v1032_v38  ;;  %vm1026_vm4 = vweird.f32 %v3290_v22  ;;  %v1010_v18 = vmul.f32 %v3300_v16, %v3260_v10  ;;  %vm1037_vm8 = vmor %vm1035_vm12, %vm1036_vm2  ;;  %v581_v32 = vpop.xlane.xlu1 %580 }
 0x178   :  { %v1468_v50 = vmul.f32 %v1008_v12, %v2421_v11  ;;  %v3323_v42 = vpop.eup %1785  ;;  %v998_v4 = vsel %vm997_vm3, %v3255_v39, %v994_v24  ;;  %v984_v51 = vmul.f32 %v3266_v33, %v983_v6  ;;  %v1022_v60 = vmul.f32 0.5, %v1021_v23  ;;  %vm1027_vm10 = vmor %vm1025_vm14, %vm1026_vm4 }
 0x179   :  { %vm1015_vm5 = vweird.f32 %v3260_v10  ;;  %vm1016_vm6 = vweird.f32 %v3300_v16  ;;  %v3329_v11 = vpop.eup %1787  ;;  %v1467_v56 = vmul.f32 %v998_v4, %v2424_v13  ;;  %v1034_v3 = vmul.f32 %v3275_v52, %v1033_v44 }
 0x17a   :  { %v1535_v28 = vmul.f32 %v2921_v7, %v1468_v50  ;;  %v1011_v0 = vmul.f32 %v3300_v16, %v1010_v18  ;;  %v988_v59 = vsel %vm987_vm7, %v3266_v33, %v984_v51  ;;  %v1023_v54 = vsub.f32 1.5, %v1022_v60  ;;  %vm1017_vm12 = vmor %vm1015_vm5, %vm1016_vm6 }
 0x17b   :  { %v1060_v13 = vmul.f32 %v3323_v42, %v3271_v57  ;;  %vm1065_vm9 = vweird.f32 %v3271_v57  ;;  %v704_v27 = vmul.f32 %v560_v41, %v2222_v40  ;;  %v1534_v48 = vmul.f32 %v2921_v7, %v1467_v56  ;;  %v593_v44 = vpop.xlane.xlu2 %592 }
 0x17c   :  { %v1602_v39 = vadd.f32 %v2948_v49, %v1535_v28  ;;  %v1466_v15 = vmul.f32 %v988_v59, %v2429_v29  ;;  %v1038_v43 = vsel %vm1037_vm8, %v3275_v52, %v1034_v3  ;;  %v1024_v33 = vmul.f32 %v3290_v22, %v1023_v54 }
 0x17d   :  { %v1471_v61 = vmul.f32 %v1038_v43, %v2451_v8  ;;  %v1012_v9 = vmul.f32 0.5, %v1011_v0  ;;  %v1061_v46 = vmul.f32 %v3323_v42, %v1060_v13  ;;  %v1601_v41 = vadd.f32 %v2948_v49, %v1534_v48 }
 0x17e   :  { %1666 = vst.msk [vmem:[#allocation5 + $0x98] sm:$0xff] %vm97_vm0, %v1602_v39  ;;  %v1533_v55 = vmul.f32 %v2921_v7, %v1466_v15  ;;  %vm1066_vm11 = vweird.f32 %v3323_v42  ;;  %v1050_v29 = vmul.f32 %v3329_v11, %v3273_v53  ;;  %v1028_v52 = vsel %vm1027_vm10, %v3290_v22, %v1024_v33 }
 0x17f   :  { %v1538_v8 = vmul.f32 %v2921_v7, %v1471_v61  ;;  %v1013_v30 = vsub.f32 1.5, %v1012_v9  ;;  %v1062_v14 = vmul.f32 0.5, %v1061_v46  ;;  %1665 = vst.msk [vmem:[#allocation5 + $0x90] sm:$0xff] %vm97_vm0, %v1601_v41  ;;  %v1470_v62 = vmul.f32 %v1028_v52, %v2454_v19  ;;  %vm1067_vm14 = vmor %vm1065_vm9, %vm1066_vm11 }
 0x180   :  { %v1600_v45 = vadd.f32 %v2948_v49, %v1533_v55  ;;  %v1051_v17 = vmul.f32 %v3329_v11, %v1050_v29  ;;  %v3371_v37 = vadd.f32 1e-05, %v704_v27  ;;  %v709_v22 = vmul.f32 %v3286_v26, %v2222_v40 }
 0x181   :  { %v1605_v35 = vadd.f32 %v2948_v49, %v1538_v8  ;;  %v1014_v58 = vmul.f32 %v3300_v16, %v1013_v30  ;;  %v1063_v63 = vsub.f32 1.5, %v1062_v14  ;;  %v1537_v21 = vmul.f32 %v2921_v7, %v1470_v62 }
 0x182   :  { %1664 = vst.msk [vmem:[#allocation5 + $0x88] sm:$0xff] %vm97_vm0, %v1600_v45  ;;  %v1052_v19 = vmul.f32 0.5, %v1051_v17  ;;  %vm1056_vm13 = vweird.f32 %v3329_v11  ;;  %1789 = vrsqrt.f32 %v3371_v37  ;;  %v3388_v2 = vadd.f32 1e-05, %v709_v22 }
 0x183   :  { %1669 = vst.msk [vmem:[#allocation5 + $0xb0] sm:$0xff] %vm97_vm0, %v1605_v35  ;;  %v1018_v31 = vsel %vm1017_vm12, %v3300_v16, %v1014_v58  ;;  %v1064_v26 = vmul.f32 %v3323_v42, %v1063_v63  ;;  %v708_v20 = vmul.f32 %v3312_v47, %v2222_v40  ;;  %v1604_v38 = vadd.f32 %v2948_v49, %v1537_v21  ;;  %v578_v16 = vpop.xlane.xlu0 %577  ;;  %v3460_v30 = vpop.xlane.xlu2 %601 }
 0x184   :  { %v1469_v10 = vmul.f32 %v1018_v31, %v2459_v34  ;;  %v1053_v12 = vsub.f32 1.5, %v1052_v19  ;;  %v707_v24 = vmul.f32 %v569_v36, %v2222_v40  ;;  %vm1055_vm15 = vweird.f32 %v3273_v53 }
 0x185   :  { %v1068_v6 = vsel %vm1067_vm14, %v3323_v42, %v1064_v26  ;;  %1791 = vrsqrt.f32 %v3388_v2  ;;  %v3402_v23 = vadd.f32 1e-05, %v708_v20  ;;  %1668 = vst.msk [vmem:[#allocation5 + $0xa8] sm:$0xff] %vm97_vm0, %v1604_v38  ;;  %vm1057_vm1 = vmor %vm1055_vm15, %vm1056_vm13  ;;  %v712_v53 = vmul.f32 %v584_v5, %v2222_v40 }
 0x186   :  { %v1536_v34 = vmul.f32 %v2921_v7, %v1469_v10  ;;  %v1474_v47 = vmul.f32 %v1068_v6, %v2481_v1  ;;  %v1054_v57 = vmul.f32 %v3329_v11, %v1053_v12  ;;  %v3408_v50 = vadd.f32 1e-05, %v707_v24 }
 0x187   :  { %1793 = vrsqrt.f32 %v3402_v23  ;;  %v711_v18 = vmul.f32 %v581_v32, %v2222_v40  ;;  %v3423_v3 = vadd.f32 1e-05, %v712_v53  ;;  %v710_v36 = vmul.f32 %v578_v16, %v2222_v40 }
 0x188   :  { %v1790_v42 = vpop.eup %1789  ;;  %v1603_v4 = vadd.f32 %v2948_v49, %v1536_v34  ;;  %v1541_v51 = vmul.f32 %v2921_v7, %v1474_v47  ;;  %v1058_v1 = vsel %vm1057_vm1, %v3329_v11, %v1054_v57  ;;  %1795 = vrsqrt.f32 %v3408_v50 }
 0x189   :  { %v1473_v60 = vmul.f32 %v1058_v1, %v2484_v25  ;;  %v1040_v28 = vmul.f32 %v1790_v42, %v3371_v37  ;;  %v3425_v0 = vadd.f32 1e-05, %v711_v18  ;;  %v715_v13 = vmul.f32 %v593_v44, %v2222_v40  ;;  %v590_v25 = vpop.xlane.xlu1 %589  ;;  %v4354_v44 = vld [vmem:[#allocation39_spill] sm:$0xff] }
 0x18a   :  { %1667 = vst.msk [vmem:[#allocation5 + $0xa0] sm:$0xff] %vm97_vm0, %v1603_v4  ;;  %v1608_v56 = vadd.f32 %v2948_v49, %v1541_v51  ;;  %vm1045_vm2 = vweird.f32 %v3371_v37  ;;  %vm1095_vm3 = vweird.f32 %v3388_v2  ;;  %1797 = vrsqrt.f32 %v3423_v3  ;;  %v4353_v37 = vld [vmem:[#allocation38_spill] sm:$0xff] }
 0x18b   :  { %v3428_v59 = vpop.eup %1791  ;;  %v1540_v11 = vmul.f32 %v2921_v7, %v1473_v60  ;;  %v1041_v54 = vmul.f32 %v1790_v42, %v1040_v28  ;;  %vm1046_vm4 = vweird.f32 %v1790_v42  ;;  %1799 = vrsqrt.f32 %v3425_v0  ;;  %v587_v46 = vpop.xlane.xlu0 %586  ;;  %v3524_v60 = vld [vmem:[%s4182_s1] ss:$0 sm:$0xff] }
 0x18c   :  { %1672 = vst.msk [vmem:[#allocation5 + $0xc8] sm:$0xff] %vm97_vm0, %v1608_v56  ;;  %v1090_v27 = vmul.f32 %v3428_v59, %v3388_v2  ;;  %vm1085_vm5 = vweird.f32 %v3402_v23  ;;  %v3448_v33 = vadd.f32 1e-05, %v710_v36  ;;  %v714_v9 = vmul.f32 %v590_v25, %v2222_v40  ;;  %vm1047_vm9 = vmor %vm1045_vm2, %vm1046_vm4  ;;  %v4355_v28 = vld [vmem:[#allocation40_spill] sm:$0xff] }
 0x18d   :  { %v3438_v39 = vpop.eup %1793  ;;  %v1607_v48 = vadd.f32 %v2948_v49, %v1540_v11  ;;  %v1042_v15 = vmul.f32 0.5, %v1041_v54  ;;  %vm1075_vm6 = vweird.f32 %v3408_v50  ;;  %v3455_v29 = vadd.f32 1e-05, %v715_v13 }
 0x18e   :  { %v3442_v43 = vpop.eup %1795  ;;  %v1091_v5 = vmul.f32 %v3428_v59, %v1090_v27  ;;  %v1080_v61 = vmul.f32 %v3438_v39, %v3402_v23  ;;  %vm1096_vm7 = vweird.f32 %v3428_v59  ;;  %1801 = vrsqrt.f32 %v3448_v33  ;;  %v611_v27 = vpop.xlane.xlu2 %610 }
 0x18f   :  { %1671 = vst.msk [vmem:[#allocation5 + $0xc0] sm:$0xff] %vm97_vm0, %v1607_v48  ;;  %v1043_v41 = vsub.f32 1.5, %v1042_v15  ;;  %v1070_v55 = vmul.f32 %v3442_v43, %v3408_v50  ;;  %vm1086_vm8 = vweird.f32 %v3438_v39  ;;  %1803 = vrsqrt.f32 %v3455_v29  ;;  %vm1097_vm13 = vmor %vm1095_vm3, %vm1096_vm7  ;;  %v3539_v48 = vld [vmem:[%s4183_s2] ss:$0 sm:$0xff] }
 0x190   :  { %v1092_v8 = vmul.f32 0.5, %v1091_v5  ;;  %v1081_v52 = vmul.f32 %v3438_v39, %v1080_v61  ;;  %v3465_v62 = vpop.eup %1797  ;;  %vm1076_vm10 = vweird.f32 %v3442_v43  ;;  %v3471_v58 = vadd.f32 1e-05, %v714_v9  ;;  %vm1087_vm15 = vmor %vm1085_vm5, %vm1086_vm8 }
 0x191   :  { %v1044_v14 = vmul.f32 %v1790_v42, %v1043_v41  ;;  %v1071_v45 = vmul.f32 %v3442_v43, %v1070_v55  ;;  %v3473_v63 = vpop.eup %1799  ;;  %v1120_v21 = vmul.f32 %v3465_v62, %v3423_v3  ;;  %vm1125_vm11 = vweird.f32 %v3423_v3  ;;  %v3493_v24 = vpop.xlane.xlu1 %598  ;;  %vm1077_vm1 = vmor %vm1075_vm6, %vm1076_vm10 }
 0x192   :  { %v1093_v17 = vsub.f32 1.5, %v1092_v8  ;;  %v1082_v35 = vmul.f32 0.5, %v1081_v52  ;;  %v3479_v19 = vmul.f32 %v587_v46, %v2222_v40  ;;  %v1110_v38 = vmul.f32 %v3473_v63, %v3425_v0 }
 0x193   :  { %v1048_v22 = vsel %vm1047_vm9, %v1790_v42, %v1044_v14  ;;  %v1072_v32 = vmul.f32 0.5, %v1071_v45  ;;  %vm1115_vm12 = vweird.f32 %v3425_v0  ;;  %v1121_v12 = vmul.f32 %v3465_v62, %v1120_v21  ;;  %v3519_v23 = vpop.xlane.xlu0 %595  ;;  %v4357_v14 = vld [vmem:[#allocation42_spill] sm:$0xff] }
 0x194   :  { %v1472_v31 = vmul.f32 %v1048_v22, %v4353_v37  ;;  %v1094_v26 = vmul.f32 %v3428_v59, %v1093_v17  ;;  %v1083_v20 = vsub.f32 1.5, %v1082_v35  ;;  %vm1126_vm14 = vweird.f32 %v3465_v62  ;;  %v3495_v16 = vpop.eup %1801 }
 0x195   :  { %v1073_v10 = vsub.f32 1.5, %v1072_v32  ;;  %1805 = vrsqrt.f32 %v3471_v58  ;;  %v1111_v2 = vmul.f32 %v3473_v63, %v1110_v38  ;;  %v3501_v57 = vpop.eup %1803  ;;  %v1122_v42 = vmul.f32 0.5, %v1121_v12  ;;  %vm1127_vm6 = vmor %vm1125_vm11, %vm1126_vm14 }
 0x196   :  { %v1539_v6 = vmul.f32 %v2921_v7, %v1472_v31  ;;  %v1098_v34 = vsel %vm1097_vm13, %v3428_v59, %v1094_v26  ;;  %v1084_v47 = vmul.f32 %v3438_v39, %v1083_v20  ;;  %v1100_v7 = vmul.f32 %v3495_v16, %v3448_v33  ;;  %v4356_v59 = vld [vmem:[#allocation41_spill] sm:$0xff] }
 0x197   :  { %v1477_v53 = vmul.f32 %v1098_v34, %v4354_v44  ;;  %v1074_v18 = vmul.f32 %v3442_v43, %v1073_v10  ;;  %v1112_v1 = vmul.f32 0.5, %v1111_v2  ;;  %vm1116_vm2 = vweird.f32 %v3473_v63 }
 0x198   :  { %v1606_v4 = vadd.f32 %v2948_v49, %v1539_v6  ;;  %v1088_v51 = vsel %vm1087_vm15, %v3438_v39, %v1084_v47  ;;  %vm1105_vm3 = vweird.f32 %v3448_v33  ;;  %v1123_v50 = vsub.f32 1.5, %v1122_v42  ;;  %vm1117_vm7 = vmor %vm1115_vm12, %vm1116_vm2  ;;  %v4359_v47 = vld [vmem:[#allocation44_spill] sm:$0xff]  ;;  %v620_v42 = vpop.xlane.xlu2 %619 }
 0x199   :  { %v1544_v49 = vmul.f32 %v3524_v60, %v1477_v53  ;;  %v1476_v56 = vmul.f32 %v1088_v51, %v4355_v28  ;;  %v1078_v36 = vsel %vm1077_vm1, %v3442_v43, %v1074_v18  ;;  %v1113_v54 = vsub.f32 1.5, %v1112_v1  ;;  %v608_v21 = vpop.xlane.xlu1 %607  ;;  %v4360_v1 = vld [vmem:[#allocation45_spill] sm:$0xff] }
 0x19a   :  { %1670 = vst.msk [vmem:[#allocation5 + $0xb8] sm:$0xff] %vm97_vm0, %v1606_v4  ;;  %v1475_v11 = vmul.f32 %v1078_v36, %v4356_v59  ;;  %v1101_v13 = vmul.f32 %v3495_v16, %v1100_v7  ;;  %v1150_v25 = vmul.f32 %v3501_v57, %v3455_v29  ;;  %v1124_v5 = vmul.f32 %v3465_v62, %v1123_v50  ;;  %v4361_v50 = vld [vmem:[#allocation46_spill] sm:$0xff] }
 0x19b   :  { %v3534_v39 = vpop.eup %1805  ;;  %v1611_v15 = vadd.f32 %v3539_v48, %v1544_v49  ;;  %v1543_v43 = vmul.f32 %v3524_v60, %v1476_v56  ;;  %vm1106_vm4 = vweird.f32 %v3495_v16  ;;  %vm1155_vm5 = vweird.f32 %v3455_v29 }
 0x19c   :  { %v1542_v61 = vmul.f32 %v3524_v60, %v1475_v11  ;;  %v1114_v9 = vmul.f32 %v3473_v63, %v1113_v54  ;;  %v1102_v46 = vmul.f32 0.5, %v1101_v13  ;;  %v1151_v41 = vmul.f32 %v3501_v57, %v1150_v25  ;;  %vm1107_vm10 = vmor %vm1105_vm3, %vm1106_vm4 }
 0x19d   :  { %1675 = vst.msk [vmem:[#allocation5 + $0xe0] sm:$0xff] %vm97_vm0, %v1611_v15  ;;  %v1610_v55 = vadd.f32 %v3539_v48, %v1543_v43  ;;  %v1128_v8 = vsel %vm1127_vm6, %v3465_v62, %v1124_v5  ;;  %vm1156_vm8 = vweird.f32 %v3501_v57  ;;  %v1140_v3 = vmul.f32 %v3534_v39, %v3471_v58  ;;  %v4358_v62 = vld [vmem:[#allocation43_spill] sm:$0xff] }
 0x19e   :  { %v1609_v52 = vadd.f32 %v3539_v48, %v1542_v61  ;;  %v1480_v45 = vmul.f32 %v1128_v8, %v4357_v14  ;;  %v1118_v17 = vsel %vm1117_vm7, %v3473_v63, %v1114_v9  ;;  %v1103_v35 = vsub.f32 1.5, %v1102_v46  ;;  %vm1157_vm12 = vmor %vm1155_vm5, %vm1156_vm8 }
 0x19f   :  { %1674 = vst.msk [vmem:[#allocation5 + $0xd8] sm:$0xff] %vm97_vm0, %v1610_v55  ;;  %v1479_v22 = vmul.f32 %v1118_v17, %v4358_v62  ;;  %v1152_v32 = vmul.f32 0.5, %v1151_v41  ;;  %v1141_v0 = vmul.f32 %v3534_v39, %v1140_v3  ;;  %vm1145_vm9 = vweird.f32 %v3471_v58 }
 0x1a0   :  { %1673 = vst.msk [vmem:[#allocation5 + $0xd0] sm:$0xff] %vm97_vm0, %v1609_v52  ;;  %v1547_v37 = vmul.f32 %v3524_v60, %v1480_v45  ;;  %v1104_v31 = vmul.f32 %v3495_v16, %v1103_v35  ;;  %v3574_v26 = vadd.f32 1e-05, %v3479_v19  ;;  %v718_v63 = vmul.f32 %v3460_v30, %v2222_v40  ;;  %v605_v30 = vpop.xlane.xlu0 %604  ;;  %v3654_v45 = vpop.xlane.xlu2 %628 }
 0x1a1   :  { %v1546_v20 = vmul.f32 %v3524_v60, %v1479_v22  ;;  %v1153_v38 = vsub.f32 1.5, %v1152_v32  ;;  %v1142_v10 = vmul.f32 0.5, %v1141_v0  ;;  %v717_v12 = vmul.f32 %v3493_v24, %v2222_v40  ;;  %v617_v13 = vpop.xlane.xlu1 %616 }
 0x1a2   :  { %v1614_v6 = vadd.f32 %v3539_v48, %v1547_v37  ;;  %v1108_v19 = vsel %vm1107_vm10, %v3495_v16, %v1104_v31  ;;  %vm1146_vm11 = vweird.f32 %v3534_v39  ;;  %1807 = vrsqrt.f32 %v3574_v26 }
 0x1a3   :  { %v1613_v34 = vadd.f32 %v3539_v48, %v1546_v20  ;;  %v1478_v2 = vmul.f32 %v1108_v19, %v4359_v47  ;;  %v1154_v33 = vmul.f32 %v3501_v57, %v1153_v38  ;;  %v1143_v44 = vsub.f32 1.5, %v1142_v10  ;;  %vm1147_vm13 = vmor %vm1145_vm9, %vm1146_vm11 }
 0x1a4   :  { %1678 = vst.msk [vmem:[#allocation5 + $0xf8] sm:$0xff] %vm97_vm0, %v1614_v6  ;;  %v3597_v24 = vadd.f32 1e-05, %v718_v63  ;;  %v3599_v16 = vadd.f32 1e-05, %v717_v12  ;;  %v716_v53 = vmul.f32 %v3519_v23, %v2222_v40  ;;  %v721_v18 = vmul.f32 %v611_v27, %v2222_v40 }
 0x1a5   :  { %1677 = vst.msk [vmem:[#allocation5 + $0xf0] sm:$0xff] %vm97_vm0, %v1613_v34  ;;  %v1545_v7 = vmul.f32 %v3524_v60, %v1478_v2  ;;  %v1158_v4 = vsel %vm1157_vm12, %v3501_v57, %v1154_v33  ;;  %v1144_v51 = vmul.f32 %v3534_v39, %v1143_v44  ;;  %v720_v29 = vmul.f32 %v608_v21, %v2222_v40 }
 0x1a6   :  { %v1483_v49 = vmul.f32 %v1158_v4, %v4360_v1  ;;  %1809 = vrsqrt.f32 %v3597_v24  ;;  %v3618_v57 = vadd.f32 1e-05, %v716_v53  ;;  %v3622_v11 = vadd.f32 1e-05, %v721_v18 }
 0x1a7   :  { %v1612_v23 = vadd.f32 %v3539_v48, %v1545_v7  ;;  %v1148_v28 = vsel %vm1147_vm13, %v3534_v39, %v1144_v51  ;;  %1811 = vrsqrt.f32 %v3599_v16  ;;  %v3624_v54 = vadd.f32 1e-05, %v720_v29 }
 0x1a8   :  { %v1808_v56 = vpop.eup %1807  ;;  %v1550_v36 = vmul.f32 %v3524_v60, %v1483_v49  ;;  %v1482_v59 = vmul.f32 %v1148_v28, %v4361_v50  ;;  %1813 = vrsqrt.f32 %v3618_v57  ;;  %v719_v15 = vmul.f32 %v605_v30, %v2222_v40  ;;  %v614_v46 = vpop.xlane.xlu0 %613 }
 0x1a9   :  { %1676 = vst.msk [vmem:[#allocation5 + $0xe8] sm:$0xff] %vm97_vm0, %v1612_v23  ;;  %v1130_v58 = vmul.f32 %v1808_v56, %v3574_v26  ;;  %1815 = vrsqrt.f32 %v3622_v11  ;;  %vm1135_vm14 = vweird.f32 %v3574_v26  ;;  %v724_v61 = vmul.f32 %v620_v42, %v2222_v40  ;;  %v3688_v47 = vpop.xlane.xlu1 %625  ;;  %v4362_v26 = vld [vmem:[#allocation47_spill] sm:$0xff] }
 0x1aa   :  { %v1617_v25 = vadd.f32 %v3539_v48, %v1550_v36  ;;  %v1549_v27 = vmul.f32 %v3524_v60, %v1482_v59  ;;  %1817 = vrsqrt.f32 %v3624_v54  ;;  %v723_v9 = vmul.f32 %v617_v13, %v2222_v40  ;;  %v4363_v36 = vld [vmem:[#allocation10_spill] sm:$0xff] }
 0x1ab   :  { %v1131_v39 = vmul.f32 %v1808_v56, %v1130_v58  ;;  %vm1185_vm15 = vweird.f32 %v3597_v24  ;;  %v3646_v3 = vadd.f32 1e-05, %v719_v15  ;;  %vm1136_vm1 = vweird.f32 %v1808_v56 }
 0x1ac   :  { %v3634_v43 = vpop.eup %1809  ;;  %1681 = vst.msk [vmem:[#allocation5 + $0x110] sm:$0xff] %vm97_vm0, %v1617_v25  ;;  %v1616_v5 = vadd.f32 %v3539_v48, %v1549_v27  ;;  %vm1175_vm2 = vweird.f32 %v3599_v16  ;;  %v3652_v14 = vadd.f32 1e-05, %v724_v61  ;;  %v3661_v22 = vmul.f32 %v614_v46, %v2222_v40  ;;  %vm1137_vm6 = vmor %vm1135_vm14, %vm1136_vm1  ;;  %v3718_v25 = vpop.xlane.xlu2 %637 }
 0x1ad   :  { %v3641_v41 = vpop.eup %1811  ;;  %v1132_v55 = vmul.f32 0.5, %v1131_v39  ;;  %v1180_v8 = vmul.f32 %v3634_v43, %v3597_v24  ;;  %1819 = vrsqrt.f32 %v3646_v3  ;;  %vm1186_vm3 = vweird.f32 %v3634_v43 }
 0x1ae   :  { %1680 = vst.msk [vmem:[#allocation5 + $0x108] sm:$0xff] %vm97_vm0, %v1616_v5  ;;  %v1170_v52 = vmul.f32 %v3641_v41, %v3599_v16  ;;  %v3656_v17 = vpop.eup %1813  ;;  %vm1165_vm4 = vweird.f32 %v3618_v57  ;;  %v3670_v37 = vadd.f32 1e-05, %v723_v9  ;;  %vm1215_vm5 = vweird.f32 %v3622_v11  ;;  %vm1187_vm11 = vmor %vm1185_vm15, %vm1186_vm3  ;;  %v4364_v16 = vld [vmem:[#allocation11_spill] sm:$0xff] }
 0x1af   :  { %v1133_v35 = vsub.f32 1.5, %v1132_v55  ;;  %v1181_v62 = vmul.f32 %v3634_v43, %v1180_v8  ;;  %v3663_v32 = vpop.eup %1815  ;;  %v1160_v21 = vmul.f32 %v3656_v17, %v3618_v57  ;;  %1821 = vrsqrt.f32 %v3652_v14 }
 0x1b0   :  { %v1171_v0 = vmul.f32 %v3641_v41, %v1170_v52  ;;  %v3672_v31 = vpop.eup %1817  ;;  %v1210_v38 = vmul.f32 %v3663_v32, %v3622_v11  ;;  %vm1176_vm7 = vweird.f32 %v3641_v41  ;;  %vm1166_vm8 = vweird.f32 %v3656_v17  ;;  %v623_v13 = vpop.xlane.xlu0 %622 }
 0x1b1   :  { %v1134_v63 = vmul.f32 %v1808_v56, %v1133_v35  ;;  %v1182_v20 = vmul.f32 0.5, %v1181_v62  ;;  %v1161_v12 = vmul.f32 %v3656_v17, %v1160_v21  ;;  %v1200_v6 = vmul.f32 %v3672_v31, %v3624_v54  ;;  %vm1177_vm12 = vmor %vm1175_vm2, %vm1176_vm7 }
 0x1b2   :  { %v1172_v10 = vmul.f32 0.5, %v1171_v0  ;;  %v1211_v34 = vmul.f32 %v3663_v32, %v1210_v38  ;;  %vm1205_vm9 = vweird.f32 %v3624_v54  ;;  %vm1216_vm10 = vweird.f32 %v3663_v32  ;;  %vm1167_vm15 = vmor %vm1165_vm4, %vm1166_vm8  ;;  %v635_v38 = vpop.xlane.xlu1 %634 }
 0x1b3   :  { %v1138_v19 = vsel %vm1137_vm6, %v1808_v56, %v1134_v63  ;;  %v1183_v30 = vsub.f32 1.5, %v1182_v20  ;;  %v1162_v44 = vmul.f32 0.5, %v1161_v12  ;;  %v1201_v53 = vmul.f32 %v3672_v31, %v1200_v6  ;;  %v3692_v18 = vpop.eup %1819  ;;  %vm1217_vm1 = vmor %vm1215_vm5, %vm1216_vm10  ;;  %v4367_v12 = vld [vmem:[#allocation14_spill] sm:$0xff] }
 0x1b4   :  { %v1481_v2 = vmul.f32 %v1138_v19, %v4362_v26  ;;  %v1173_v33 = vsub.f32 1.5, %v1172_v10  ;;  %v1212_v7 = vmul.f32 0.5, %v1211_v34  ;;  %1823 = vrsqrt.f32 %v3670_v37 }
 0x1b5   :  { %v1184_v42 = vmul.f32 %v3634_v43, %v1183_v30  ;;  %v1163_v29 = vsub.f32 1.5, %v1162_v44  ;;  %v1202_v1 = vmul.f32 0.5, %v1201_v53  ;;  %v3703_v49 = vpop.eup %1821  ;;  %vm1206_vm13 = vweird.f32 %v3672_v31 }
 0x1b6   :  { %v1548_v4 = vmul.f32 %v3524_v60, %v1481_v2  ;;  %v1174_v51 = vmul.f32 %v3641_v41, %v1173_v33  ;;  %v1213_v28 = vsub.f32 1.5, %v1212_v7  ;;  %v1190_v24 = vmul.f32 %v3692_v18, %v3646_v3  ;;  %vm1207_vm4 = vmor %vm1205_vm9, %vm1206_vm13 }
 0x1b7   :  { %v1188_v23 = vsel %vm1187_vm11, %v3634_v43, %v1184_v42  ;;  %v1164_v58 = vmul.f32 %v3656_v17, %v1163_v29  ;;  %vm1195_vm14 = vweird.f32 %v3646_v3  ;;  %v1203_v15 = vsub.f32 1.5, %v1202_v1  ;;  %v647_v29 = vpop.xlane.xlu2 %646  ;;  %v4368_v1 = vld [vmem:[#allocation9_spill] sm:$0xff] }
 0x1b8   :  { %v1615_v56 = vadd.f32 %v3539_v48, %v1548_v4  ;;  %v1486_v50 = vmul.f32 %v1188_v23, %v4363_v36  ;;  %v1178_v59 = vsel %vm1177_vm12, %v3641_v41, %v1174_v51  ;;  %v1214_v39 = vmul.f32 %v3663_v32, %v1213_v28  ;;  %v4365_v41 = vld [vmem:[#allocation8_spill] sm:$0xff]  ;;  %v632_v51 = vpop.xlane.xlu0 %631 }
 0x1b9   :  { %v1485_v27 = vmul.f32 %v1178_v59, %v4364_v16  ;;  %v1191_v43 = vmul.f32 %v3692_v18, %v1190_v24  ;;  %v1168_v61 = vsel %vm1167_vm15, %v3656_v17, %v1164_v58  ;;  %vm1196_vm2 = vweird.f32 %v3692_v18  ;;  %v4366_v17 = vld [vmem:[#allocation13_spill] sm:$0xff] }
 0x1ba   :  { %1679 = vst.msk [vmem:[#allocation5 + $0x100] sm:$0xff] %vm97_vm0, %v1615_v56  ;;  %v1553_v5 = vmul.f32 %v3524_v60, %v1486_v50  ;;  %v1240_v57 = vmul.f32 %v3703_v49, %v3652_v14  ;;  %vm1245_vm3 = vweird.f32 %v3652_v14  ;;  %v3738_v9 = vpop.eup %1823  ;;  %v1484_v55 = vmul.f32 %v1168_v61, %v4365_v41  ;;  %vm1197_vm6 = vmor %vm1195_vm14, %vm1196_vm2  ;;  %v4369_v14 = vld [vmem:[#allocation16_spill] sm:$0xff] }
 0x1bb   :  { %v1552_v46 = vmul.f32 %v3524_v60, %v1485_v27  ;;  %v1218_v8 = vsel %vm1217_vm1, %v3663_v32, %v1214_v39  ;;  %v1204_v52 = vmul.f32 %v3672_v31, %v1203_v15  ;;  %v1192_v62 = vmul.f32 0.5, %v1191_v43  ;;  %v644_v39 = vpop.xlane.xlu1 %643  ;;  %v4370_v15 = vld [vmem:[#allocation17_spill] sm:$0xff] }
 0x1bc   :  { %v1620_v11 = vadd.f32 %v3539_v48, %v1553_v5  ;;  %v1489_v35 = vmul.f32 %v1218_v8, %v4366_v17  ;;  %v1241_v0 = vmul.f32 %v3703_v49, %v1240_v57  ;;  %v1551_v63 = vmul.f32 %v3524_v60, %v1484_v55 }
 0x1bd   :  { %v1619_v21 = vadd.f32 %v3539_v48, %v1552_v46  ;;  %v1208_v32 = vsel %vm1207_vm4, %v3672_v31, %v1204_v52  ;;  %v1230_v20 = vmul.f32 %v3738_v9, %v3670_v37  ;;  %v1193_v6 = vsub.f32 1.5, %v1192_v62 }
 0x1be   :  { %1684 = vst.msk [vmem:[#allocation5 + $0x128] sm:$0xff] %vm97_vm0, %v1620_v11  ;;  %v1556_v10 = vmul.f32 %v3524_v60, %v1489_v35  ;;  %v1488_v54 = vmul.f32 %v1208_v32, %v4367_v12  ;;  %v1242_v19 = vmul.f32 0.5, %v1241_v0  ;;  %v1618_v30 = vadd.f32 %v3539_v48, %v1551_v63 }
 0x1bf   :  { %1683 = vst.msk [vmem:[#allocation5 + $0x120] sm:$0xff] %vm97_vm0, %v1619_v21  ;;  %vm1246_vm5 = vweird.f32 %v3703_v49  ;;  %v1231_v31 = vmul.f32 %v3738_v9, %v1230_v20  ;;  %v3764_v34 = vadd.f32 1e-05, %v3661_v22  ;;  %v1194_v33 = vmul.f32 %v3692_v18, %v1193_v6  ;;  %v656_v0 = vpop.xlane.xlu2 %655 }
 0x1c0   :  { %v1623_v26 = vadd.f32 %v3539_v48, %v1556_v10  ;;  %v1555_v2 = vmul.f32 %v3524_v60, %v1488_v54  ;;  %v1243_v44 = vsub.f32 1.5, %v1242_v19  ;;  %1682 = vst.msk [vmem:[#allocation5 + $0x118] sm:$0xff] %vm97_vm0, %v1618_v30  ;;  %vm1236_vm7 = vweird.f32 %v3738_v9  ;;  %vm1247_vm8 = vmor %vm1245_vm3, %vm1246_vm5  ;;  %v641_v62 = vpop.xlane.xlu0 %640 }
 0x1c1   :  { %v1232_v53 = vmul.f32 0.5, %v1231_v31  ;;  %1825 = vrsqrt.f32 %v3764_v34  ;;  %v727_v22 = vmul.f32 %v3654_v45, %v2222_v40  ;;  %v1198_v7 = vsel %vm1197_vm6, %v3692_v18, %v1194_v33 }
 0x1c2   :  { %1687 = vst.msk [vmem:[#allocation5 + $0x140] sm:$0xff] %vm97_vm0, %v1623_v26  ;;  %v1622_v42 = vadd.f32 %v3539_v48, %v1555_v2  ;;  %v1244_v4 = vmul.f32 %v3703_v49, %v1243_v44  ;;  %v726_v3 = vmul.f32 %v3688_v47, %v2222_v40  ;;  %v1487_v23 = vmul.f32 %v1198_v7, %v4368_v1 }
 0x1c3   :  { %v1233_v45 = vsub.f32 1.5, %v1232_v53  ;;  %v3789_v28 = vadd.f32 1e-05, %v727_v22  ;;  %v725_v24 = vmul.f32 %v623_v13, %v2222_v40  ;;  %vm1235_vm9 = vweird.f32 %v3670_v37 }
 0x1c4   :  { %1686 = vst.msk [vmem:[#allocation5 + $0x138] sm:$0xff] %vm97_vm0, %v1622_v42  ;;  %v1248_v18 = vsel %vm1247_vm8, %v3703_v49, %v1244_v4  ;;  %v3795_v47 = vadd.f32 1e-05, %v726_v3  ;;  %v730_v56 = vmul.f32 %v3718_v25, %v2222_v40  ;;  %v1554_v36 = vmul.f32 %v3524_v60, %v1487_v23  ;;  %vm1237_vm10 = vmor %vm1235_vm9, %vm1236_vm7  ;;  %v3871_v42 = vpop.xlane.xlu1 %652 }
 0x1c5   :  { %v1492_v50 = vmul.f32 %v1248_v18, %v4369_v14  ;;  %v1234_v59 = vmul.f32 %v3738_v9, %v1233_v45  ;;  %1827 = vrsqrt.f32 %v3789_v28  ;;  %v3806_v49 = vadd.f32 1e-05, %v725_v24 }
 0x1c6   :  { %1829 = vrsqrt.f32 %v3795_v47  ;;  %v729_v37 = vmul.f32 %v635_v38, %v2222_v40  ;;  %v1621_v13 = vadd.f32 %v3539_v48, %v1554_v36  ;;  %v3812_v27 = vadd.f32 1e-05, %v730_v56 }
 0x1c7   :  { %v1826_v58 = vpop.eup %1825  ;;  %v1559_v25 = vmul.f32 %v3524_v60, %v1492_v50  ;;  %v1238_v16 = vsel %vm1237_vm10, %v3738_v9, %v1234_v59  ;;  %1831 = vrsqrt.f32 %v3806_v49  ;;  %v728_v9 = vmul.f32 %v632_v51, %v2222_v40 }
 0x1c8   :  { %v1491_v43 = vmul.f32 %v1238_v16, %v4370_v15  ;;  %v1220_v5 = vmul.f32 %v1826_v58, %v3764_v34  ;;  %1685 = vst.msk [vmem:[#allocation5 + $0x130] sm:$0xff] %vm97_vm0, %v1621_v13  ;;  %1833 = vrsqrt.f32 %v3812_v27  ;;  %v3821_v41 = vadd.f32 1e-05, %v729_v37  ;;  %v4372_v13 = vld [vmem:[#allocation19_spill] sm:$0xff] }
 0x1c9   :  { %v1626_v61 = vadd.f32 %v3539_v48, %v1559_v25  ;;  %vm1225_vm11 = vweird.f32 %v3764_v34  ;;  %v733_v8 = vmul.f32 %v647_v29, %v2222_v40  ;;  %vm1275_vm12 = vweird.f32 %v3789_v28  ;;  %v4371_v29 = vld [vmem:[#allocation12_spill] sm:$0xff] }
 0x1ca   :  { %v1558_v57 = vmul.f32 %v3524_v60, %v1491_v43  ;;  %v1221_v46 = vmul.f32 %v1826_v58, %v1220_v5  ;;  %vm1226_vm13 = vweird.f32 %v1826_v58  ;;  %vm1265_vm14 = vweird.f32 %v3795_v47  ;;  %v4373_v43 = vld [vmem:[#allocation20_spill] sm:$0xff] }
 0x1cb   :  { %v3824_v55 = vpop.eup %1827  ;;  %1690 = vst.msk [vmem:[#allocation5 + $0x158] sm:$0xff] %vm97_vm0, %v1626_v61  ;;  %1835 = vrsqrt.f32 %v3821_v41  ;;  %v732_v63 = vmul.f32 %v644_v39, %v2222_v40  ;;  %v3844_v10 = vadd.f32 1e-05, %v728_v9  ;;  %v3846_v12 = vadd.f32 1e-05, %v733_v8  ;;  %vm1227_vm3 = vmor %vm1225_vm11, %vm1226_vm13 }
 0x1cc   :  { %v3829_v52 = vpop.eup %1829  ;;  %v1625_v11 = vadd.f32 %v3539_v48, %v1558_v57  ;;  %v1222_v17 = vmul.f32 0.5, %v1221_v46  ;;  %v1270_v35 = vmul.f32 %v3824_v55, %v3789_v28  ;;  %vm1255_vm15 = vweird.f32 %v3806_v49 }
 0x1cd   :  { %v1260_v21 = vmul.f32 %v3829_v52, %v3795_v47  ;;  %v3840_v32 = vpop.eup %1831  ;;  %v3855_v30 = vmul.f32 %v641_v62, %v2222_v40  ;;  %v3858_v31 = vmul.f32 %v656_v0, %v2222_v40  ;;  %vm1276_vm1 = vweird.f32 %v3824_v55 }
 0x1ce   :  { %1689 = vst.msk [vmem:[#allocation5 + $0x150] sm:$0xff] %vm97_vm0, %v1625_v11  ;;  %v1223_v20 = vsub.f32 1.5, %v1222_v17  ;;  %v1271_v38 = vmul.f32 %v3824_v55, %v1270_v35  ;;  %v3848_v54 = vpop.eup %1833  ;;  %v1250_v19 = vmul.f32 %v3840_v32, %v3806_v49  ;;  %vm1305_vm2 = vweird.f32 %v3812_v27  ;;  %vm1277_vm7 = vmor %vm1275_vm12, %vm1276_vm1 }
 0x1cf   :  { %v1261_v6 = vmul.f32 %v3829_v52, %v1260_v21  ;;  %v1300_v33 = vmul.f32 %v3848_v54, %v3812_v27  ;;  %1837 = vrsqrt.f32 %v3844_v10  ;;  %v3869_v22 = vadd.f32 1e-05, %v732_v63  ;;  %v4375_v21 = vld [vmem:[#allocation22_spill] sm:$0xff] }
 0x1d0   :  { %v1224_v26 = vmul.f32 %v1826_v58, %v1223_v20  ;;  %v1272_v2 = vmul.f32 0.5, %v1271_v38  ;;  %v1251_v53 = vmul.f32 %v3840_v32, %v1250_v19  ;;  %1839 = vrsqrt.f32 %v3846_v12  ;;  %v662_v20 = vpop.xlane.xlu1 %661 }
 0x1d1   :  { %v1262_v44 = vmul.f32 0.5, %v1261_v6  ;;  %v1301_v3 = vmul.f32 %v3848_v54, %v1300_v33  ;;  %v3875_v51 = vpop.eup %1835  ;;  %vm1266_vm4 = vweird.f32 %v3829_v52  ;;  %vm1256_vm5 = vweird.f32 %v3840_v32 }
 0x1d2   :  { %v1228_v7 = vsel %vm1227_vm3, %v1826_v58, %v1224_v26  ;;  %v1273_v4 = vsub.f32 1.5, %v1272_v2  ;;  %v1252_v23 = vmul.f32 0.5, %v1251_v53  ;;  %v1290_v18 = vmul.f32 %v3875_v51, %v3821_v41  ;;  %vm1267_vm8 = vmor %vm1265_vm14, %vm1266_vm4 }
 0x1d3   :  { %v1490_v34 = vmul.f32 %v1228_v7, %v4371_v29  ;;  %v1263_v1 = vsub.f32 1.5, %v1262_v44  ;;  %v1302_v24 = vmul.f32 0.5, %v1301_v3  ;;  %vm1295_vm6 = vweird.f32 %v3821_v41  ;;  %vm1257_vm10 = vmor %vm1255_vm15, %vm1256_vm5  ;;  %v4376_v41 = vld [vmem:[#allocation23_spill] sm:$0xff] }
 0x1d4   :  { %v1274_v45 = vmul.f32 %v3824_v55, %v1273_v4  ;;  %v1253_v14 = vsub.f32 1.5, %v1252_v23  ;;  %1841 = vrsqrt.f32 %v3869_v22  ;;  %vm1306_vm9 = vweird.f32 %v3848_v54 }
 0x1d5   :  { %v1557_v56 = vmul.f32 %v3524_v60, %v1490_v34  ;;  %v1264_v36 = vmul.f32 %v3829_v52, %v1263_v1  ;;  %v1303_v59 = vsub.f32 1.5, %v1302_v24  ;;  %v1291_v37 = vmul.f32 %v3875_v51, %v1290_v18  ;;  %v3896_v58 = vpop.eup %1837  ;;  %vm1307_vm12 = vmor %vm1305_vm2, %vm1306_vm9  ;;  %v665_v1 = vpop.xlane.xlu2 %664 }
 0x1d6   :  { %v1278_v50 = vsel %vm1277_vm7, %v3824_v55, %v1274_v45  ;;  %v1254_v39 = vmul.f32 %v3840_v32, %v1253_v14  ;;  %v3902_v15 = vpop.eup %1839  ;;  %v1280_v57 = vmul.f32 %v3896_v58, %v3844_v10  ;;  %vm1285_vm11 = vweird.f32 %v3844_v10  ;;  %v650_v55 = vpop.xlane.xlu0 %649 }
 0x1d7   :  { %v1624_v28 = vadd.f32 %v3539_v48, %v1557_v56  ;;  %v1495_v25 = vmul.f32 %v1278_v50, %v4372_v13  ;;  %v1268_v16 = vsel %vm1267_vm8, %v3829_v52, %v1264_v36  ;;  %v1304_v5 = vmul.f32 %v3848_v54, %v1303_v59  ;;  %v4374_v52 = vld [vmem:[#allocation15_spill] sm:$0xff] }
 0x1d8   :  { %v1494_v47 = vmul.f32 %v1268_v16, %v4373_v43  ;;  %v1292_v61 = vmul.f32 0.5, %v1291_v37  ;;  %v1258_v9 = vsel %vm1257_vm10, %v3840_v32, %v1254_v39  ;;  %vm1296_vm13 = vweird.f32 %v3875_v51  ;;  %v4378_v37 = vld [vmem:[#allocation25_spill] sm:$0xff]  ;;  %v671_v39 = vpop.xlane.xlu1 %670 }
 0x1d9   :  { %1688 = vst.msk [vmem:[#allocation5 + $0x148] sm:$0xff] %vm97_vm0, %v1624_v28  ;;  %v1562_v46 = vmul.f32 %v3524_v60, %v1495_v25  ;;  %v1330_v49 = vmul.f32 %v3902_v15, %v3846_v12  ;;  %v1493_v11 = vmul.f32 %v1258_v9, %v4374_v52  ;;  %v1308_v17 = vsel %vm1307_vm12, %v3848_v54, %v1304_v5  ;;  %vm1297_vm15 = vmor %vm1295_vm6, %vm1296_vm13 }
 0x1da   :  { %v1561_v8 = vmul.f32 %v3524_v60, %v1494_v47  ;;  %v1293_v35 = vsub.f32 1.5, %v1292_v61  ;;  %v3926_v62 = vpop.eup %1841  ;;  %v1498_v27 = vmul.f32 %v1308_v17, %v4375_v21  ;;  %v1281_v63 = vmul.f32 %v3896_v58, %v1280_v57 }
 0x1db   :  { %v1629_v0 = vadd.f32 %v3539_v48, %v1562_v46  ;;  %v1331_v32 = vmul.f32 %v3902_v15, %v1330_v49  ;;  %v1560_v6 = vmul.f32 %v3524_v60, %v1493_v11  ;;  %vm1286_vm14 = vweird.f32 %v3896_v58 }
 0x1dc   :  { %v1628_v38 = vadd.f32 %v3539_v48, %v1561_v8  ;;  %v1294_v19 = vmul.f32 %v3875_v51, %v1293_v35  ;;  %v1565_v54 = vmul.f32 %v3524_v60, %v1498_v27  ;;  %v1282_v26 = vmul.f32 0.5, %v1281_v63  ;;  %vm1287_vm3 = vmor %vm1285_vm11, %vm1286_vm14  ;;  %v4379_v8 = vld [vmem:[#allocation26_spill] sm:$0xff] }
 0x1dd   :  { %1693 = vst.msk [vmem:[#allocation5 + $0x170] sm:$0xff] %vm97_vm0, %v1629_v0  ;;  %v1332_v2 = vmul.f32 0.5, %v1331_v32  ;;  %v1320_v33 = vmul.f32 %v3926_v62, %v3869_v22  ;;  %v1627_v44 = vadd.f32 %v3539_v48, %v1560_v6  ;;  %vm1336_vm1 = vweird.f32 %v3902_v15  ;;  %v674_v35 = vpop.xlane.xlu2 %673 }
 0x1de   :  { %1692 = vst.msk [vmem:[#allocation5 + $0x168] sm:$0xff] %vm97_vm0, %v1628_v38  ;;  %v1298_v53 = vsel %vm1297_vm15, %v3875_v51, %v1294_v19  ;;  %v3949_v7 = vadd.f32 1e-05, %v3855_v30  ;;  %v1632_v4 = vadd.f32 %v3539_v48, %v1565_v54  ;;  %v1283_v29 = vsub.f32 1.5, %v1282_v26  ;;  %v659_v50 = vpop.xlane.xlu0 %658 }
 0x1df   :  { %v1497_v3 = vmul.f32 %v1298_v53, %v4376_v41  ;;  %v1333_v34 = vsub.f32 1.5, %v1332_v2  ;;  %1691 = vst.msk [vmem:[#allocation5 + $0x160] sm:$0xff] %vm97_vm0, %v1627_v44  ;;  %vm1335_vm2 = vweird.f32 %v3846_v12  ;;  %v1321_v23 = vmul.f32 %v3926_v62, %v1320_v33 }
 0x1e0   :  { %1843 = vrsqrt.f32 %v3949_v7  ;;  %v3958_v51 = vadd.f32 1e-05, %v3858_v31  ;;  %1696 = vst.msk [vmem:[#allocation5 + $0x188] sm:$0xff] %vm97_vm0, %v1632_v4  ;;  %v1284_v45 = vmul.f32 %v3896_v58, %v1283_v29  ;;  %v735_v24 = vmul.f32 %v3871_v42, %v2222_v40  ;;  %vm1337_vm4 = vmor %vm1335_vm2, %vm1336_vm1  ;;  %v4377_v42 = vld [vmem:[#allocation18_spill] sm:$0xff] }
 0x1e1   :  { %v1564_v30 = vmul.f32 %v3524_v60, %v1497_v3  ;;  %v1334_v12 = vmul.f32 %v3902_v15, %v1333_v34  ;;  %v1322_v31 = vmul.f32 0.5, %v1321_v23  ;;  %vm1326_vm5 = vweird.f32 %v3926_v62  ;;  %v680_v3 = vpop.xlane.xlu1 %679 }
 0x1e2   :  { %1845 = vrsqrt.f32 %v3958_v51  ;;  %v734_v18 = vmul.f32 %v650_v55, %v2222_v40  ;;  %v1288_v10 = vsel %vm1287_vm3, %v3896_v58, %v1284_v45  ;;  %v3978_v14 = vadd.f32 1e-05, %v735_v24 }
 0x1e3   :  { %v1631_v56 = vadd.f32 %v3539_v48, %v1564_v30  ;;  %v1338_v36 = vsel %vm1337_vm4, %v3902_v15, %v1334_v12  ;;  %v1496_v59 = vmul.f32 %v1288_v10, %v4377_v42  ;;  %v1323_v13 = vsub.f32 1.5, %v1322_v31 }
 0x1e4   :  { %v1501_v28 = vmul.f32 %v1338_v36, %v4378_v37  ;;  %v3982_v25 = vadd.f32 1e-05, %v734_v18  ;;  %vm1325_vm6 = vweird.f32 %v3869_v22  ;;  %1847 = vrsqrt.f32 %v3978_v14 }
 0x1e5   :  { %1695 = vst.msk [vmem:[#allocation5 + $0x180] sm:$0xff] %vm97_vm0, %v1631_v56  ;;  %v739_v58 = vmul.f32 %v665_v1, %v2222_v40  ;;  %v738_v16 = vmul.f32 %v662_v20, %v2222_v40  ;;  %v1563_v43 = vmul.f32 %v3524_v60, %v1496_v59  ;;  %v1324_v5 = vmul.f32 %v3926_v62, %v1323_v13  ;;  %vm1327_vm7 = vmor %vm1325_vm6, %vm1326_vm5 }
 0x1e6   :  { %v3989_v15 = vpop.eup %1843  ;;  %v1568_v47 = vmul.f32 %v3524_v60, %v1501_v28  ;;  %1849 = vrsqrt.f32 %v3982_v25  ;;  %vm1315_vm8 = vweird.f32 %v3949_v7  ;;  %vm1365_vm9 = vweird.f32 %v3958_v51  ;;  %v668_v33 = vpop.xlane.xlu0 %667 }
 0x1e7   :  { %v1310_v22 = vmul.f32 %v3989_v15, %v3949_v7  ;;  %v3999_v61 = vadd.f32 1e-05, %v739_v58  ;;  %v1630_v46 = vadd.f32 %v3539_v48, %v1563_v43  ;;  %v1328_v49 = vsel %vm1327_vm7, %v3926_v62, %v1324_v5  ;;  %v4380_v7 = vld [vmem:[#allocation21_spill] sm:$0xff]  ;;  %v4381_v58 = vld [vmem:[#allocation28_spill] sm:$0xff] }
 0x1e8   :  { %v4001_v57 = vpop.eup %1845  ;;  %v1635_v9 = vadd.f32 %v3539_v48, %v1568_v47  ;;  %v4006_v55 = vadd.f32 1e-05, %v738_v16  ;;  %v1500_v52 = vmul.f32 %v1328_v49, %v4379_v8  ;;  %v737_v62 = vmul.f32 %v659_v50, %v2222_v40 }
 0x1e9   :  { %v1311_v11 = vmul.f32 %v3989_v15, %v1310_v22  ;;  %v1360_v17 = vmul.f32 %v4001_v57, %v3958_v51  ;;  %1694 = vst.msk [vmem:[#allocation5 + $0x178] sm:$0xff] %vm97_vm0, %v1630_v46  ;;  %1851 = vrsqrt.f32 %v3999_v61  ;;  %vm1316_vm10 = vweird.f32 %v3989_v15 }
 0x1ea   :  { %v4017_v0 = vpop.eup %1847  ;;  %1699 = vst.msk [vmem:[#allocation5 + $0x1a0] sm:$0xff] %vm97_vm0, %v1635_v9  ;;  %v1567_v21 = vmul.f32 %v3524_v60, %v1500_v52  ;;  %1853 = vrsqrt.f32 %v4006_v55  ;;  %vm1355_vm11 = vweird.f32 %v3978_v14  ;;  %v4029_v38 = vadd.f32 1e-05, %v737_v62  ;;  %vm1317_vm1 = vmor %vm1315_vm8, %vm1316_vm10 }
 0x1eb   :  { %v1312_v27 = vmul.f32 0.5, %v1311_v11  ;;  %v1361_v63 = vmul.f32 %v4001_v57, %v1360_v17  ;;  %v1350_v20 = vmul.f32 %v4017_v0, %v3978_v14  ;;  %v742_v6 = vmul.f32 %v674_v35, %v2222_v40  ;;  %v4382_v14 = vld [vmem:[#allocation29_spill] sm:$0xff]  ;;  %v4383_v17 = vld [vmem:[#allocation24_spill] sm:$0xff] }
 0x1ec   :  { %v4023_v32 = vpop.eup %1849  ;;  %v1634_v19 = vadd.f32 %v3539_v48, %v1567_v21  ;;  %vm1345_vm12 = vweird.f32 %v3982_v25  ;;  %vm1366_vm13 = vweird.f32 %v4001_v57  ;;  %vm1356_vm14 = vweird.f32 %v4017_v0 }
 0x1ed   :  { %v1313_v54 = vsub.f32 1.5, %v1312_v27  ;;  %v1362_v26 = vmul.f32 0.5, %v1361_v63  ;;  %v1340_v2 = vmul.f32 %v4023_v32, %v3982_v25  ;;  %v1351_v44 = vmul.f32 %v4017_v0, %v1350_v20  ;;  %vm1367_vm3 = vmor %vm1365_vm9, %vm1366_vm13 }
 0x1ee   :  { %1855 = vrsqrt.f32 %v4029_v38  ;;  %1698 = vst.msk [vmem:[#allocation5 + $0x198] sm:$0xff] %vm97_vm0, %v1634_v19  ;;  %vm1346_vm15 = vweird.f32 %v4023_v32  ;;  %v4050_v1 = vadd.f32 1e-05, %v742_v6  ;;  %v741_v23 = vmul.f32 %v671_v39, %v2222_v40  ;;  %vm1357_vm6 = vmor %vm1355_vm11, %vm1356_vm14 }
 0x1ef   :  { %v1314_v53 = vmul.f32 %v3989_v15, %v1313_v54  ;;  %v1363_v4 = vsub.f32 1.5, %v1362_v26  ;;  %v1341_v41 = vmul.f32 %v4023_v32, %v1340_v2  ;;  %v4044_v29 = vpop.eup %1851  ;;  %v1352_v34 = vmul.f32 0.5, %v1351_v44  ;;  %vm1347_vm8 = vmor %vm1345_vm12, %vm1346_vm15  ;;  %v4385_v44 = vld [vmem:[#allocation32_spill] sm:$0xff] }
 0x1f0   :  { %v740_v30 = vmul.f32 %v668_v33, %v2222_v40  ;;  %v1854_v45 = vpop.eup %1853  ;;  %v1390_v18 = vmul.f32 %v4044_v29, %v3999_v61  ;;  %vm1395_vm2 = vweird.f32 %v3999_v61  ;;  %vm1385_vm4 = vweird.f32 %v4006_v55  ;;  %v4384_v61 = vld [vmem:[#allocation31_spill] sm:$0xff] }
 0x1f1   :  { %v1318_v12 = vsel %vm1317_vm1, %v3989_v15, %v1314_v53  ;;  %v1364_v24 = vmul.f32 %v4001_v57, %v1363_v4  ;;  %v1342_v31 = vmul.f32 0.5, %v1341_v41  ;;  %v1353_v10 = vsub.f32 1.5, %v1352_v34 }
 0x1f2   :  { %v1499_v56 = vmul.f32 %v1318_v12, %v4380_v7  ;;  %v1380_v36 = vmul.f32 %v1854_v45, %v4006_v55  ;;  %v744_v50 = vmul.f32 %v680_v3, %v2222_v40  ;;  %v1391_v37 = vmul.f32 %v4044_v29, %v1390_v18  ;;  %v677_v55 = vpop.xlane.xlu0 %676 }
 0x1f3   :  { %v1368_v42 = vsel %vm1367_vm3, %v4001_v57, %v1364_v24  ;;  %v1343_v59 = vsub.f32 1.5, %v1342_v31  ;;  %vm1396_vm5 = vweird.f32 %v4044_v29  ;;  %v1354_v16 = vmul.f32 %v4017_v0, %v1353_v10 }
 0x1f4   :  { %v1856_v28 = vpop.eup %1855  ;;  %v1566_v13 = vmul.f32 %v3524_v60, %v1499_v56  ;;  %v1504_v51 = vmul.f32 %v1368_v42, %v4381_v58  ;;  %v1381_v39 = vmul.f32 %v1854_v45, %v1380_v36  ;;  %v1392_v43 = vmul.f32 0.5, %v1391_v37  ;;  %vm1397_vm10 = vmor %vm1395_vm2, %vm1396_vm5 }
 0x1f5   :  { %v1344_v15 = vmul.f32 %v4023_v32, %v1343_v59  ;;  %vm1386_vm7 = vweird.f32 %v1854_v45  ;;  %v1370_v47 = vmul.f32 %v1856_v28, %v4029_v38  ;;  %v1358_v57 = vsel %vm1357_vm6, %v4017_v0, %v1354_v16 }
 0x1f6   :  { %v1633_v5 = vadd.f32 %v3539_v48, %v1566_v13  ;;  %v1571_v22 = vmul.f32 %v3524_v60, %v1504_v51  ;;  %v1382_v46 = vmul.f32 0.5, %v1381_v39  ;;  %v1503_v9 = vmul.f32 %v1358_v57, %v4382_v14  ;;  %vm1387_vm11 = vmor %vm1385_vm4, %vm1386_vm7 }
 0x1f7   :  { %v1348_v49 = vsel %vm1347_vm8, %v4023_v32, %v1344_v15  ;;  %v1393_v8 = vsub.f32 1.5, %v1392_v43  ;;  %v1371_v52 = vmul.f32 %v1856_v28, %v1370_v47  ;;  %1857 = vrsqrt.f32 %v4050_v1 }
 0x1f8   :  { %1697 = vst.msk [vmem:[#allocation5 + $0x190] sm:$0xff] %vm97_vm0, %v1633_v5  ;;  %v1638_v11 = vadd.f32 %v3539_v48, %v1571_v22  ;;  %v1502_v35 = vmul.f32 %v1348_v49, %v4383_v17  ;;  %v1383_v62 = vsub.f32 1.5, %v1382_v46  ;;  %v1570_v0 = vmul.f32 %v3524_v60, %v1503_v9  ;;  %v4387_v46 = vld [vmem:[#allocation34_spill] sm:$0xff] }
 0x1f9   :  { %v1394_v25 = vmul.f32 %v4044_v29, %v1393_v8  ;;  %v1372_v21 = vmul.f32 0.5, %v1371_v52  ;;  %vm1376_vm9 = vweird.f32 %v1856_v28  ;;  %v4100_v32 = vadd.f32 1e-05, %v741_v23  ;;  %v4132_v23 = vld [vmem:[%s4183_s2] ss:$0 sm:$0xff] }
 0x1fa   :  { %1702 = vst.msk [vmem:[#allocation5 + $0x1b8] sm:$0xff] %vm97_vm0, %v1638_v11  ;;  %v1569_v27 = vmul.f32 %v3524_v60, %v1502_v35  ;;  %v1384_v63 = vmul.f32 %v1854_v45, %v1383_v62  ;;  %v4102_v20 = vadd.f32 1e-05, %v740_v30  ;;  %v1637_v6 = vadd.f32 %v3539_v48, %v1570_v0 }
 0x1fb   :  { %v1398_v19 = vsel %vm1397_vm10, %v4044_v29, %v1394_v25  ;;  %v1373_v54 = vsub.f32 1.5, %v1372_v21  ;;  %v4109_v60 = vadd.f32 1e-05, %v744_v50  ;;  %1859 = vrsqrt.f32 %v4100_v32  ;;  %v4388_v25 = vld [vmem:[#allocation35_spill] sm:$0xff] }
 0x1fc   :  { %v1636_v26 = vadd.f32 %v3539_v48, %v1569_v27  ;;  %v1507_v2 = vmul.f32 %v1398_v19, %v4384_v61  ;;  %v1388_v33 = vsel %vm1387_vm11, %v1854_v45, %v1384_v63  ;;  %1701 = vst.msk [vmem:[#allocation5 + $0x1b0] sm:$0xff] %vm97_vm0, %v1637_v6  ;;  %vm1375_vm12 = vweird.f32 %v4029_v38  ;;  %v4122_v48 = vld [vmem:[%s4182_s1] ss:$0 sm:$0xff]  ;;  %v4386_v45 = vld [vmem:[#allocation27_spill] sm:$0xff]  ;;  %v4389_v63 = vld [vmem:[#allocation30_spill] sm:$0xff]  ;;  %s1927_s1 = smov [#allocation5]  }
 0x1fd   :  { %v1506_v53 = vmul.f32 %v1388_v33, %v4385_v44  ;;  %v1374_v4 = vmul.f32 %v1856_v28, %v1373_v54  ;;  %1861 = vrsqrt.f32 %v4102_v20  ;;  %v1858_v41 = vpop.eup %1857  ;;  %vm1377_vm13 = vmor %vm1375_vm12, %vm1376_vm9  ;;  %v743_v24 = vmul.f32 %v677_v55, %v2222_v40  ;;  %v4390_v54 = vld [vmem:[#allocation48_spill] sm:$0xff]  ;;  %s1715_s2 = sshll.u32 %s1927_s1, 4  ;;  %s1716_s2 = int_to_ptr.vmem [resolvable:$true] %s1715_s2 }
 0x1fe   :  { %1700 = vst.msk [vmem:[#allocation5 + $0x1a8] sm:$0xff] %vm97_vm0, %v1636_v26  ;;  %v1574_v3 = vmul.f32 %v4122_v48, %v1507_v2  ;;  %1863 = vrsqrt.f32 %v4109_v60  ;;  %v1420_v34 = vmul.f32 %v1858_v41, %v4050_v1  ;;  %vm1426_vm14 = vweird.f32 %v1858_v41 }
 0x1ff   :  { %v1573_v29 = vmul.f32 %v4122_v48, %v1506_v53  ;;  %v1378_v38 = vsel %vm1377_vm13, %v1856_v28, %v1374_v4  ;;  %v4140_v10 = vadd.f32 1e-05, %v743_v24  ;;  %vm1425_vm15 = vweird.f32 %v4050_v1 }
 0x200   :  { %v1641_v30 = vadd.f32 %v4132_v23, %v1574_v3  ;;  %v1505_v12 = vmul.f32 %v1378_v38, %v4386_v45  ;;  %v1421_v18 = vmul.f32 %v1858_v41, %v1420_v34  ;;  %vm1427_vm1 = vmor %vm1425_vm15, %vm1426_vm14  ;;  %vm1415_vm3 = vweird.f32 %v4100_v32 }
 0x201   :  { %v1640_v31 = vadd.f32 %v4132_v23, %v1573_v29  ;;  %v1860_v7 = vpop.eup %1859  ;;  %1865 = vrsqrt.f32 %v4140_v10  ;;  %vm1405_vm7 = vweird.f32 %v4102_v20  ;;  %vm1445_vm9 = vweird.f32 %v4109_v60 }
 0x202   :  { %1705 = vst.msk [vmem:[#allocation5 + $0x1d0] sm:$0xff] %vm97_vm0, %v1641_v30  ;;  %v1572_v56 = vmul.f32 %v4122_v48, %v1505_v12  ;;  %v1422_v50 = vmul.f32 0.5, %v1421_v18  ;;  %v1410_v42 = vmul.f32 %v1860_v7, %v4100_v32  ;;  %vm1416_vm2 = vweird.f32 %v1860_v7 }
 0x203   :  { %v1862_v36 = vpop.eup %1861  ;;  %1704 = vst.msk [vmem:[#allocation5 + $0x1c8] sm:$0xff] %vm97_vm0, %v1640_v31  ;;  %vm1417_vm6 = vmor %vm1415_vm3, %vm1416_vm2  ;;  %vm1435_vm12 = vweird.f32 %v4140_v10 }
 0x204   :  { %v1864_v59 = vpop.eup %1863  ;;  %v1639_v37 = vadd.f32 %v4132_v23, %v1572_v56  ;;  %v1400_v40 = vmul.f32 %v1862_v36, %v4102_v20  ;;  %v1423_v28 = vsub.f32 1.5, %v1422_v50  ;;  %v1411_v13 = vmul.f32 %v1860_v7, %v1410_v42 }
 0x205   :  { %v1440_v58 = vmul.f32 %v1864_v59, %v4109_v60  ;;  %vm1406_vm4 = vweird.f32 %v1862_v36  ;;  %vm1446_vm5 = vweird.f32 %v1864_v59 }
 0x206   :  { %1703 = vst.msk [vmem:[#allocation5 + $0x1c0] sm:$0xff] %vm97_vm0, %v1639_v37  ;;  %v1401_v51 = vmul.f32 %v1862_v36, %v1400_v40  ;;  %v1424_v16 = vmul.f32 %v1858_v41, %v1423_v28  ;;  %v1412_v39 = vmul.f32 0.5, %v1411_v13  ;;  %vm1407_vm8 = vmor %vm1405_vm7, %vm1406_vm4 }
 0x207   :  { %v1441_v15 = vmul.f32 %v1864_v59, %v1440_v58  ;;  %v1866_v57 = vpop.eup %1865  ;;  %vm1447_vm10 = vmor %vm1445_vm9, %vm1446_vm5 }
 0x208   :  { %v1402_v43 = vmul.f32 0.5, %v1401_v51  ;;  %v1428_v47 = vsel %vm1427_vm1, %v1858_v41, %v1424_v16  ;;  %v1413_v5 = vsub.f32 1.5, %v1412_v39  ;;  %v1430_v1 = vmul.f32 %v1866_v57, %v4140_v10  ;;  %v4391_v41 = vld [vmem:[#allocation33_spill] sm:$0xff] }
 0x209   :  { %v1442_v22 = vmul.f32 0.5, %v1441_v15  ;;  %v1510_v14 = vmul.f32 %v1428_v47, %v4387_v46  ;;  %vm1436_vm11 = vweird.f32 %v1866_v57 }
 0x20a   :  { %v1403_v9 = vsub.f32 1.5, %v1402_v43  ;;  %v1414_v49 = vmul.f32 %v1860_v7, %v1413_v5  ;;  %v1431_v62 = vmul.f32 %v1866_v57, %v1430_v1  ;;  %vm1437_vm13 = vmor %vm1435_vm12, %vm1436_vm11 }
 0x20b   :  { %v1443_v8 = vsub.f32 1.5, %v1442_v22  ;;  %v1577_v52 = vmul.f32 %v4122_v48, %v1510_v14 }
 0x20c   :  { %v1404_v11 = vmul.f32 %v1862_v36, %v1403_v9  ;;  %v1418_v17 = vsel %vm1417_vm6, %v1860_v7, %v1414_v49  ;;  %v1432_v19 = vmul.f32 0.5, %v1431_v62 }
 0x20d   :  { %v1444_v35 = vmul.f32 %v1864_v59, %v1443_v8  ;;  %v1644_v0 = vadd.f32 %v4132_v23, %v1577_v52  ;;  %v1509_v21 = vmul.f32 %v1418_v17, %v4388_v25 }
 0x20e   :  { %v1408_v27 = vsel %vm1407_vm8, %v1862_v36, %v1404_v11  ;;  %v1433_v60 = vsub.f32 1.5, %v1432_v19 }
 0x20f   :  { %v1508_v32 = vmul.f32 %v1408_v27, %v4389_v63  ;;  %v1448_v6 = vsel %vm1447_vm10, %v1864_v59, %v1444_v35  ;;  %1708 = vst.msk [vmem:[#allocation5 + $0x1e8] sm:$0xff] %vm97_vm0, %v1644_v0  ;;  %v1576_v20 = vmul.f32 %v4122_v48, %v1509_v21 }
 0x210   :  { %v1512_v26 = vmul.f32 %v1448_v6, %v4390_v54  ;;  %v1434_v53 = vmul.f32 %v1866_v57, %v1433_v60 }
 0x211   :  { %v1575_v61 = vmul.f32 %v4122_v48, %v1508_v32  ;;  %v1643_v2 = vadd.f32 %v4132_v23, %v1576_v20 }
 0x212   :  { %v1579_v33 = vmul.f32 %v4122_v48, %v1512_v26  ;;  %v1438_v55 = vsel %vm1437_vm13, %v1866_v57, %v1434_v53 }
 0x213   :  { %v1642_v44 = vadd.f32 %v4132_v23, %v1575_v61  ;;  %1707 = vst.msk [vmem:[#allocation5 + $0x1e0] sm:$0xff] %vm97_vm0, %v1643_v2  ;;  %v1511_v3 = vmul.f32 %v1438_v55, %v4391_v41 }
 0x214   :  { %v1646_v4 = vadd.f32 %v4132_v23, %v1579_v33 }
 0x215   :  { %1706 = vst.msk [vmem:[#allocation5 + $0x1d8] sm:$0xff] %vm97_vm0, %v1642_v44  ;;  %v1578_v29 = vmul.f32 %v4122_v48, %v1511_v3 }
 0x216   :  { %1710 = vst.msk [vmem:[#allocation5 + $0x1f8] sm:$0xff] %vm97_vm0, %v1646_v4 }
 0x217   :  { %v1645_v38 = vadd.f32 %v4132_v23, %v1578_v29 }
 0x219   :  { %1709 = vst.msk [vmem:[#allocation5 + $0x1f0] sm:$0xff] %vm97_vm0, %v1645_v38 }
 0x21a   :  { %1723 = dma.vmem_to_hbm [thread:$0]  %s1716_s2, 8192, %s1718_s5, [#allocation4], %s1924_s17, %s1924_s17, %s1925_s18  }
 0x21b   :  { %1921 = dma.done.wait [#allocation4], 8192  }
 0x21c   :  { %1922 = vsyncadd [#allocation4], 4294959104 }
 0x21d   :  { %1728 = vsyncpa [#allocation3], 1 }
 0x21e   :  { %1729 = vsyncpa [#allocation4], 1 }

</bundles_post_ra>
